<compile_context>
chip_gen: v6e
topology: v6e:2x2x1
jax: 0.10.0
libtpu: 0.0.40
codegen_flags: <defaults>
</compile_context>

<pallas_src>
import math

import jax
import jax.numpy as jnp
import numpy as np
from jax.experimental import pallas as pl
from jax.experimental.pallas import tpu as pltpu

RWKV_K_CLAMP = 60.0
RWKV_K_EPS = 1e-9


def _shift_rows_down(a, rows=1):
    """a[i] <- a[i - rows] with wraparound; callers mask the wrapped rows."""
    return jnp.roll(a, rows, axis=0)


def rwkv_timemix_kernel(x_ref, wrev_ref, mixk_ref, mixv_ref, mixr_ref,
                        wkey_ref, wval_ref, wrec_ref, wout_ref, o_ref,
                        ks_ref, kvs_ref, wk_ref, wkv_ref):
    # x_ref:   (M, C)  flattened rows of BATCH_BLOCK full sequences (M = bb * T)
    # wrev_ref:(T, C)  per-channel decay table indexed by delay d
    # mix*:    (1, C)  token-mix coefficients
    # w*_ref:  (C, C)  bf16 projection weights
    # scratch: ks/kvs  = shift registers, wk/wkv = conv accumulators (all f32 VMEM)
    M, C = x_ref.shape
    T = wrev_ref.shape[0]

    x = x_ref[...]                                                 # (M, C) f32
    # position of each flat row inside its own sequence
    local_t = jax.lax.broadcasted_iota(jnp.int32, (M, 1), 0) % T

    # time_shift: xx[b, t] = x[b, t-1], xx[b, 0] = 0  (flat rows, mask t == 0)
    xx = _shift_rows_down(x, 1)
    xx = jnp.where(local_t == 0, 0.0, xx)

    # token mix:  x*m + xx*(1-m)  ==  x + (1-m)*(xx-x)
    dmix = xx - x
    xk = x + (1.0 - mixk_ref[...]) * dmix
    xv = x + (1.0 - mixv_ref[...]) * dmix
    xr = x + (1.0 - mixr_ref[...]) * dmix

    # projections: bf16 operands on the MXU, f32 accumulation
    bf16 = jnp.bfloat16
    k = jnp.dot(xk.astype(bf16), wkey_ref[...], preferred_element_type=jnp.float32)
    v = jnp.dot(xv.astype(bf16), wval_ref[...], preferred_element_type=jnp.float32)
    r = jnp.dot(xr.astype(bf16), wrec_ref[...], preferred_element_type=jnp.float32)

    k = jnp.exp(jnp.minimum(k, RWKV_K_CLAMP))                      # f32
    kv = k * v                                                     # f32

    # ---- TimeX causal conv: wkv[t] = sum_{d<=t} wrev[d] * kv[t-d] ------------
    # Shift registers: at loop step d they hold k / kv delayed by d rows.
    ks_ref[...] = k
    kvs_ref[...] = kv
    wk_ref[...] = jnp.full((M, C), RWKV_K_EPS, jnp.float32)
    wkv_ref[...] = jnp.zeros((M, C), jnp.float32)

    def conv_step(d, w_rot):
        # w_rot row 0 holds wrev[d]; rows whose sequence is shorter than d (and
        # rows whose shifted data crossed a sequence boundary) are masked out.
        w_d = w_rot[0:1, :]                                        # (1, C)
        w_eff = jnp.where(local_t >= d, w_d, 0.0)                  # (M, C)
        wkv_ref[...] = wkv_ref[...] + w_eff * kvs_ref[...]
        wk_ref[...] = wk_ref[...] + w_eff * ks_ref[...]
        # advance registers to delay d+1 (wrapped rows are masked next step)
        kvs_ref[...] = _shift_rows_down(kvs_ref[...], 1)
        ks_ref[...] = _shift_rows_down(ks_ref[...], 1)
        # bring wrev[d+1] to row 0
        return jnp.roll(w_rot, -1, axis=0)

    jax.lax.fori_loop(0, T, conv_step, wrev_ref[...])

    # rwkv = sigmoid(r) * wkv / wk   (approx reciprocal -> EUP slot)
    rwkv = jax.nn.sigmoid(r) * (wkv_ref[...] * pl.reciprocal(wk_ref[...], approx=True))
    out = jnp.dot(rwkv.astype(bf16), wout_ref[...], preferred_element_type=jnp.float32)
    o_ref[...] = out.astype(o_ref.dtype)


def rwkv_timemix(x, params, *, batch_block=8, out_dtype=jnp.float32):
    """RWKV TimeMix forward. x: (B, T, C) float32."""
    B, T, C = x.shape
    assert C % 128 == 0, "channel dim must be lane-aligned (multiple of 128)"
    batch_block = min(batch_block, B)
    assert B % batch_block == 0, "B must be a multiple of batch_block"
    M = batch_block * T
    assert M % 8 == 0

    # Flatten B*T into the M (sublane) dimension -> big MXU tiles, lane-dense out.
    x2d = x.reshape(B * T, C)
    # wrev[d, c] = w[c, T-1-d]: weight for delay d (d=0 -> time_first).
    wrev = jnp.flip(params["w"], axis=1).T.astype(jnp.float32)     # (T, C)
    as_bf16 = lambda a: a.astype(jnp.bfloat16)

    out2d = pl.pallas_call(
        rwkv_timemix_kernel,
        out_shape=jax.ShapeDtypeStruct((B * T, C), out_dtype),
        grid_spec=pltpu.PrefetchScalarGridSpec(
            num_scalar_prefetch=0,
            grid=(B // batch_block,),
            in_specs=[
                pl.BlockSpec((M, C), lambda i: (i, 0)),   # x rows (per grid step)
                pl.BlockSpec((T, C), lambda i: (0, 0)),   # wrev decay table (resident)
                pl.BlockSpec((1, C), lambda i: (0, 0)),   # time_mix_k
                pl.BlockSpec((1, C), lambda i: (0, 0)),   # time_mix_v
                pl.BlockSpec((1, C), lambda i: (0, 0)),   # time_mix_r
                pl.BlockSpec((C, C), lambda i: (0, 0)),   # W_key      (bf16)
                pl.BlockSpec((C, C), lambda i: (0, 0)),   # W_value    (bf16)
                pl.BlockSpec((C, C), lambda i: (0, 0)),   # W_recept.  (bf16)
                pl.BlockSpec((C, C), lambda i: (0, 0)),   # W_output   (bf16)
            ],
            out_specs=pl.BlockSpec((M, C), lambda i: (i, 0)),
            scratch_shapes=[
                pltpu.VMEM((M, C), jnp.float32),   # k  shift register
                pltpu.VMEM((M, C), jnp.float32),   # kv shift register
                pltpu.VMEM((M, C), jnp.float32),   # wk  accumulator
                pltpu.VMEM((M, C), jnp.float32),   # wkv accumulator
            ],
        ),
        compiler_params=pltpu.CompilerParams(
            dimension_semantics=("parallel",)),
    )(x2d, wrev, params["mix_k"], params["mix_v"], params["mix_r"],
      as_bf16(params["w_key"]), as_bf16(params["w_val"]),
      as_bf16(params["w_rec"]), as_bf16(params["w_out"]))

    return out2d.reshape(B, T, C)


# ----------------------------- pure-JAX reference -----------------------------
def build_wfull(w, T):
    """Reference-only. w: (C, T). Wfull[u,t,c] = w[c, T-1-t+u] if u<=t else 0."""
    uu = jnp.arange(T)[:, None]
    tt = jnp.arange(T)[None, :]
    idx = jnp.clip(T - 1 - tt + uu, 0, T - 1)
    mask = (uu <= tt)
    wT = jnp.transpose(w)
    return jnp.where(mask[:, :, None], wT[idx], 0.0)


def rwkv_timemix_ref(x, params):
    """Pure-JAX reference of the PyTorch forward (direct-sum TimeX, f32 weights)."""
    B, T, C = x.shape
    xx = jnp.pad(x, ((0, 0), (1, 0), (0, 0)))[:, :T, :]
    mk, mv, mr = params["mix_k"][0], params["mix_v"][0], params["mix_r"][0]
    xk = x * mk + xx * (1.0 - mk)
    xv = x * mv + xx * (1.0 - mv)
    xr = x * mr + xx * (1.0 - mr)
    k = xk @ params["w_key"]
    v = xv @ params["w_val"]
    r = xr @ params["w_rec"]
    k = jnp.exp(jnp.minimum(k, RWKV_K_CLAMP))
    kv = k * v
    wfull = build_wfull(params["w"], T)
    wkv = jnp.einsum("utc,buc->btc", wfull, kv)
    wk = jnp.einsum("utc,buc->btc", wfull, k) + RWKV_K_EPS
    rwkv = jax.nn.sigmoid(r) * (wkv / wk)
    return rwkv @ params["w_out"]


def make_params(key, T, C):
    kk, kv_, kr, ko = jax.random.split(key, 4)
    scale = 0.1 / math.sqrt(C)
    w_key = jax.random.normal(kk, (C, C), jnp.float32) * scale
    w_val = jax.random.normal(kv_, (C, C), jnp.float32) * scale
    w_rec = jax.random.normal(kr, (C, C), jnp.float32) * scale
    w_out = jax.random.normal(ko, (C, C), jnp.float32) * scale

    # time_mix_{k,v,r}: first half 0, second half 1 (as in module __init__)
    mix = jnp.concatenate(
        [jnp.zeros((C // 2,), jnp.float32), jnp.ones((C - C // 2,), jnp.float32)]
    )[None, :]                                               # (1, C)

    time_decay = jnp.ones((C,), jnp.float32)
    time_first = jnp.full((C,), math.log(0.3), jnp.float32)
    time_curve = jnp.array([-(T - 2 - i) for i in range(T - 1)], jnp.float32)
    time_w = jnp.concatenate(
        [jnp.exp(time_decay)[:, None] * time_curve[None, :], time_first[:, None]],
        axis=-1)                                             # (C, T)
    w = jnp.exp(time_w)                                      # (C, T)

    return dict(w=w, mix_k=mix, mix_v=mix, mix_r=mix,
                w_key=w_key, w_val=w_val, w_rec=w_rec, w_out=w_out)


if __name__ == "__main__":
    # B multiple of batch_block (8, matching the module's B_GROUP_FORWARD),
    # T % 4 == 0, C lane-aligned (multiple of 128).
    B, T, C = 16, 16, 128
    key = jax.random.PRNGKey(0)
    kx, kp = jax.random.split(key)
    x = jax.random.normal(kx, (B, T, C), jnp.float32)
    params = make_params(kp, T, C)

    out = jax.block_until_ready(rwkv_timemix(x, params))
    ref = jax.block_until_ready(rwkv_timemix_ref(x, params))

    np.testing.assert_allclose(np.asarray(out), np.asarray(ref),
                               rtol=2e-2, atol=2e-3)
    print("KERNEL_OK")
</pallas_src>

<mosaic_0001>
module attributes {stable_mosaic.version = 11 : i64} {
  func.func @rwkv_timemix_kernel(%arg0: i32, %arg1: memref<128x128xf32, #tpu.memory_space<vmem>>, %arg2: memref<16x128xf32, #tpu.memory_space<vmem>>, %arg3: memref<1x128xf32, #tpu.memory_space<vmem>>, %arg4: memref<1x128xf32, #tpu.memory_space<vmem>>, %arg5: memref<1x128xf32, #tpu.memory_space<vmem>>, %arg6: memref<128x128xbf16, #tpu.memory_space<vmem>>, %arg7: memref<128x128xbf16, #tpu.memory_space<vmem>>, %arg8: memref<128x128xbf16, #tpu.memory_space<vmem>>, %arg9: memref<128x128xbf16, #tpu.memory_space<vmem>>, %arg10: memref<128x128xf32, #tpu.memory_space<vmem>>, %arg11: memref<128x128xf32, #tpu.memory_space<vmem>>, %arg12: memref<128x128xf32, #tpu.memory_space<vmem>>, %arg13: memref<128x128xf32, #tpu.memory_space<vmem>>, %arg14: memref<128x128xf32, #tpu.memory_space<vmem>>) attributes {dimension_semantics = [#tpu.dimension_semantics<parallel>], iteration_bounds = array<i64: 2>, scalar_prefetch = 0 : i64, scratch_operands = 4 : i64, tpu.core_type = #tpu.core_type<tc>, window_params = [{transform_indices = @transform_0, window_bounds = array<i64: 128, 128>}, {pipeline_mode = #tpu.pipeline_mode<synchronous>, transform_indices = @transform_1, window_bounds = array<i64: 16, 128>}, {pipeline_mode = #tpu.pipeline_mode<synchronous>, transform_indices = @transform_2, window_bounds = array<i64: 1, 128>}, {pipeline_mode = #tpu.pipeline_mode<synchronous>, transform_indices = @transform_3, window_bounds = array<i64: 1, 128>}, {pipeline_mode = #tpu.pipeline_mode<synchronous>, transform_indices = @transform_4, window_bounds = array<i64: 1, 128>}, {pipeline_mode = #tpu.pipeline_mode<synchronous>, transform_indices = @transform_5, window_bounds = array<i64: 128, 128>}, {pipeline_mode = #tpu.pipeline_mode<synchronous>, transform_indices = @transform_6, window_bounds = array<i64: 128, 128>}, {pipeline_mode = #tpu.pipeline_mode<synchronous>, transform_indices = @transform_7, window_bounds = array<i64: 128, 128>}, {pipeline_mode = #tpu.pipeline_mode<synchronous>, transform_indices = @transform_8, window_bounds = array<i64: 128, 128>}, {transform_indices = @transform_9, window_bounds = array<i64: 128, 128>}]} {
    %c0 = arith.constant 0 : index
    %c0_0 = arith.constant 0 : index
    %0 = vector.load %arg1[%c0, %c0_0] : memref<128x128xf32, #tpu.memory_space<vmem>>, vector<128x128xf32>
    %1 = tpu.iota {dimensions = array<i32: 0>} : vector<128x1xi32>
    %c16_i32 = arith.constant 16 : i32
    %c0_i32 = arith.constant 0 : i32
    %2 = arith.cmpi eq, %c16_i32, %c0_i32 : i32
    %c1_i32 = arith.constant 1 : i32
    %3 = arith.select %2, %c1_i32, %c16_i32 : i32
    %4 = vector.broadcast %3 : i32 to vector<128x1xi32>
    %5 = arith.remsi %1, %4 : vector<128x1xi32>
    %c0_i32_1 = arith.constant 0 : i32
    %6 = vector.broadcast %c0_i32_1 : i32 to vector<128x1xi32>
    %7 = arith.cmpi ne, %5, %6 : vector<128x1xi32>
    %c0_i32_2 = arith.constant 0 : i32
    %8 = vector.broadcast %c0_i32_2 : i32 to vector<128x1xi32>
    %9 = arith.cmpi slt, %5, %8 : vector<128x1xi32>
    %c0_i32_3 = arith.constant 0 : i32
    %10 = arith.cmpi slt, %3, %c0_i32_3 : i32
    %11 = vector.broadcast %10 : i1 to vector<128x1xi1>
    %12 = vector.broadcast %11 : vector<128x1xi1> to vector<128x1xi1>
    %13 = arith.xori %9, %12 : vector<128x1xi1>
    %14 = arith.andi %13, %7 : vector<128x1xi1>
    %15 = vector.broadcast %3 : i32 to vector<128x1xi32>
    %16 = arith.addi %5, %15 : vector<128x1xi32>
    %17 = arith.select %14, %16, %5 : vector<128x1xi1>, vector<128x1xi32>
    %18 = vector.extract_strided_slice %0 {offsets = [127, 0], sizes = [1, 128], strides = [1, 1]} : vector<128x128xf32> to vector<1x128xf32>
    %19 = vector.extract_strided_slice %0 {offsets = [0, 0], sizes = [127, 128], strides = [1, 1]} : vector<128x128xf32> to vector<127x128xf32>
    %20 = tpu.concatenate %18, %19 in 0 : vector<1x128xf32>, vector<127x128xf32> -> vector<128x128xf32>
    %c0_i32_4 = arith.constant 0 : i32
    %21 = vector.broadcast %c0_i32_4 : i32 to vector<128x1xi32>
    %22 = arith.cmpi eq, %17, %21 : vector<128x1xi32>
    %cst = arith.constant 0.000000e+00 : f32
    %23 = vector.shape_cast %22 : vector<128x1xi1> to vector<128x1xi1>
    %24 = vector.broadcast %23 : vector<128x1xi1> to vector<128x128xi1>
    %25 = vector.broadcast %cst : f32 to vector<128x128xf32>
    %26 = arith.select %24, %25, %20 : vector<128x128xi1>, vector<128x128xf32>
    %27 = arith.subf %26, %0 : vector<128x128xf32>
    %c0_5 = arith.constant 0 : index
    %c0_6 = arith.constant 0 : index
    %28 = vector.load %arg3[%c0_5, %c0_6] : memref<1x128xf32, #tpu.memory_space<vmem>>, vector<1x128xf32>
    %cst_7 = arith.constant 1.000000e+00 : f32
    %29 = vector.broadcast %cst_7 : f32 to vector<1x128xf32>
    %30 = arith.subf %29, %28 : vector<1x128xf32>
    %31 = vector.broadcast %30 : vector<1x128xf32> to vector<128x128xf32>
    %32 = arith.mulf %31, %27 : vector<128x128xf32>
    %33 = arith.addf %0, %32 : vector<128x128xf32>
    %c0_8 = arith.constant 0 : index
    %c0_9 = arith.constant 0 : index
    %34 = vector.load %arg4[%c0_8, %c0_9] : memref<1x128xf32, #tpu.memory_space<vmem>>, vector<1x128xf32>
    %cst_10 = arith.constant 1.000000e+00 : f32
    %35 = vector.broadcast %cst_10 : f32 to vector<1x128xf32>
    %36 = arith.subf %35, %34 : vector<1x128xf32>
    %37 = vector.broadcast %36 : vector<1x128xf32> to vector<128x128xf32>
    %38 = arith.mulf %37, %27 : vector<128x128xf32>
    %39 = arith.addf %0, %38 : vector<128x128xf32>
    %c0_11 = arith.constant 0 : index
    %c0_12 = arith.constant 0 : index
    %40 = vector.load %arg5[%c0_11, %c0_12] : memref<1x128xf32, #tpu.memory_space<vmem>>, vector<1x128xf32>
    %cst_13 = arith.constant 1.000000e+00 : f32
    %41 = vector.broadcast %cst_13 : f32 to vector<1x128xf32>
    %42 = arith.subf %41, %40 : vector<1x128xf32>
    %43 = vector.broadcast %42 : vector<1x128xf32> to vector<128x128xf32>
    %44 = arith.mulf %43, %27 : vector<128x128xf32>
    %45 = arith.addf %0, %44 : vector<128x128xf32>
    %46 = arith.truncf %33 : vector<128x128xf32> to vector<128x128xbf16>
    %c0_14 = arith.constant 0 : index
    %c0_15 = arith.constant 0 : index
    %47 = vector.load %arg6[%c0_14, %c0_15] : memref<128x128xbf16, #tpu.memory_space<vmem>>, vector<128x128xbf16>
    %cst_16 = arith.constant dense<0.000000e+00> : vector<128x128xf32>
    %48 = tpu.matmul %46, %47, %cst_16 {dimension_numbers = #tpu.dot_dimension_numbers<[1], [0], [0], [1], [0, 0, 1, 1], [], []>} : vector<128x128xbf16>, vector<128x128xbf16>, vector<128x128xf32> -> vector<128x128xf32>
    %49 = arith.truncf %39 : vector<128x128xf32> to vector<128x128xbf16>
    %c0_17 = arith.constant 0 : index
    %c0_18 = arith.constant 0 : index
    %50 = vector.load %arg7[%c0_17, %c0_18] : memref<128x128xbf16, #tpu.memory_space<vmem>>, vector<128x128xbf16>
    %cst_19 = arith.constant dense<0.000000e+00> : vector<128x128xf32>
    %51 = tpu.matmul %49, %50, %cst_19 {dimension_numbers = #tpu.dot_dimension_numbers<[1], [0], [0], [1], [0, 0, 1, 1], [], []>} : vector<128x128xbf16>, vector<128x128xbf16>, vector<128x128xf32> -> vector<128x128xf32>
    %52 = arith.truncf %45 : vector<128x128xf32> to vector<128x128xbf16>
    %c0_20 = arith.constant 0 : index
    %c0_21 = arith.constant 0 : index
    %53 = vector.load %arg8[%c0_20, %c0_21] : memref<128x128xbf16, #tpu.memory_space<vmem>>, vector<128x128xbf16>
    %cst_22 = arith.constant dense<0.000000e+00> : vector<128x128xf32>
    %54 = tpu.matmul %52, %53, %cst_22 {dimension_numbers = #tpu.dot_dimension_numbers<[1], [0], [0], [1], [0, 0, 1, 1], [], []>} : vector<128x128xbf16>, vector<128x128xbf16>, vector<128x128xf32> -> vector<128x128xf32>
    %cst_23 = arith.constant 6.000000e+01 : f32
    %55 = vector.broadcast %cst_23 : f32 to vector<128x128xf32>
    %56 = arith.minimumf %48, %55 : vector<128x128xf32>
    %57 = math.exp %56 : vector<128x128xf32>
    %58 = arith.mulf %57, %51 : vector<128x128xf32>
    %c0_24 = arith.constant 0 : index
    %c0_25 = arith.constant 0 : index
    %59 = vector.load %arg11[%c0_24, %c0_25] : memref<128x128xf32, #tpu.memory_space<vmem>>, vector<128x128xf32>
    tpu.vector_store %arg11[%c0_24, %c0_25], %57 {strides = array<i32>} : memref<128x128xf32, #tpu.memory_space<vmem>>, vector<128x128xf32>,
    %c0_26 = arith.constant 0 : index
    %c0_27 = arith.constant 0 : index
    %60 = vector.load %arg12[%c0_26, %c0_27] : memref<128x128xf32, #tpu.memory_space<vmem>>, vector<128x128xf32>
    tpu.vector_store %arg12[%c0_26, %c0_27], %58 {strides = array<i32>} : memref<128x128xf32, #tpu.memory_space<vmem>>, vector<128x128xf32>,
    %cst_28 = arith.constant 9.99999971E-10 : f32
    %61 = vector.broadcast %cst_28 : f32 to vector<128x128xf32>
    %c0_29 = arith.constant 0 : index
    %c0_30 = arith.constant 0 : index
    %62 = vector.load %arg13[%c0_29, %c0_30] : memref<128x128xf32, #tpu.memory_space<vmem>>, vector<128x128xf32>
    tpu.vector_store %arg13[%c0_29, %c0_30], %61 {strides = array<i32>} : memref<128x128xf32, #tpu.memory_space<vmem>>, vector<128x128xf32>,
    %cst_31 = arith.constant 0.000000e+00 : f32
    %63 = vector.broadcast %cst_31 : f32 to vector<128x128xf32>
    %c0_32 = arith.constant 0 : index
    %c0_33 = arith.constant 0 : index
    %64 = vector.load %arg14[%c0_32, %c0_33] : memref<128x128xf32, #tpu.memory_space<vmem>>, vector<128x128xf32>
    tpu.vector_store %arg14[%c0_32, %c0_33], %63 {strides = array<i32>} : memref<128x128xf32, #tpu.memory_space<vmem>>, vector<128x128xf32>,
    %c0_34 = arith.constant 0 : index
    %c0_35 = arith.constant 0 : index
    %65 = vector.load %arg2[%c0_34, %c0_35] : memref<16x128xf32, #tpu.memory_space<vmem>>, vector<16x128xf32>
    %c0_i32_36 = arith.constant 0 : i32
    %c16_i32_37 = arith.constant 16 : i32
    %66 = arith.addi %c0_i32_36, %c16_i32_37 : i32
    %c1_i32_38 = arith.constant 1 : i32
    %67 = scf.for %arg15 = %c0_i32_36 to %66 step %c1_i32_38 iter_args(%arg16 = %65) -> (vector<16x128xf32>)  : i32 {
      %82 = vector.extract_strided_slice %arg16 {offsets = [0, 0], sizes = [1, 128], strides = [1, 1]} : vector<16x128xf32> to vector<1x128xf32>
      %83 = vector.broadcast %arg15 : i32 to vector<128x1xi32>
      %84 = arith.cmpi sge, %17, %83 : vector<128x1xi32>
      %cst_50 = arith.constant 0.000000e+00 : f32
      %85 = vector.shape_cast %84 : vector<128x1xi1> to vector<128x1xi1>
      %86 = vector.broadcast %85 : vector<128x1xi1> to vector<128x128xi1>
      %87 = vector.shape_cast %82 : vector<1x128xf32> to vector<1x128xf32>
      %88 = vector.broadcast %87 : vector<1x128xf32> to vector<128x128xf32>
      %89 = vector.broadcast %cst_50 : f32 to vector<128x128xf32>
      %90 = arith.select %86, %88, %89 : vector<128x128xi1>, vector<128x128xf32>
      %c0_51 = arith.constant 0 : index
      %c0_52 = arith.constant 0 : index
      %91 = vector.load %arg14[%c0_51, %c0_52] : memref<128x128xf32, #tpu.memory_space<vmem>>, vector<128x128xf32>
      %c0_53 = arith.constant 0 : index
      %c0_54 = arith.constant 0 : index
      %92 = vector.load %arg12[%c0_53, %c0_54] : memref<128x128xf32, #tpu.memory_space<vmem>>, vector<128x128xf32>
      %93 = arith.mulf %90, %92 : vector<128x128xf32>
      %94 = arith.addf %91, %93 : vector<128x128xf32>
      %c0_55 = arith.constant 0 : index
      %c0_56 = arith.constant 0 : index
      %95 = vector.load %arg14[%c0_55, %c0_56] : memref<128x128xf32, #tpu.memory_space<vmem>>, vector<128x128xf32>
      tpu.vector_store %arg14[%c0_55, %c0_56], %94 {strides = array<i32>} : memref<128x128xf32, #tpu.memory_space<vmem>>, vector<128x128xf32>,
      %c0_57 = arith.constant 0 : index
      %c0_58 = arith.constant 0 : index
      %96 = vector.load %arg13[%c0_57, %c0_58] : memref<128x128xf32, #tpu.memory_space<vmem>>, vector<128x128xf32>
      %c0_59 = arith.constant 0 : index
      %c0_60 = arith.constant 0 : index
      %97 = vector.load %arg11[%c0_59, %c0_60] : memref<128x128xf32, #tpu.memory_space<vmem>>, vector<128x128xf32>
      %98 = arith.mulf %90, %97 : vector<128x128xf32>
      %99 = arith.addf %96, %98 : vector<128x128xf32>
      %c0_61 = arith.constant 0 : index
      %c0_62 = arith.constant 0 : index
      %100 = vector.load %arg13[%c0_61, %c0_62] : memref<128x128xf32, #tpu.memory_space<vmem>>, vector<128x128xf32>
      tpu.vector_store %arg13[%c0_61, %c0_62], %99 {strides = array<i32>} : memref<128x128xf32, #tpu.memory_space<vmem>>, vector<128x128xf32>,
      %c0_63 = arith.constant 0 : index
      %c0_64 = arith.constant 0 : index
      %101 = vector.load %arg12[%c0_63, %c0_64] : memref<128x128xf32, #tpu.memory_space<vmem>>, vector<128x128xf32>
      %102 = vector.extract_strided_slice %101 {offsets = [127, 0], sizes = [1, 128], strides = [1, 1]} : vector<128x128xf32> to vector<1x128xf32>
      %103 = vector.extract_strided_slice %101 {offsets = [0, 0], sizes = [127, 128], strides = [1, 1]} : vector<128x128xf32> to vector<127x128xf32>
      %104 = tpu.concatenate %102, %103 in 0 : vector<1x128xf32>, vector<127x128xf32> -> vector<128x128xf32>
      %c0_65 = arith.constant 0 : index
      %c0_66 = arith.constant 0 : index
      %105 = vector.load %arg12[%c0_65, %c0_66] : memref<128x128xf32, #tpu.memory_space<vmem>>, vector<128x128xf32>
      tpu.vector_store %arg12[%c0_65, %c0_66], %104 {strides = array<i32>} : memref<128x128xf32, #tpu.memory_space<vmem>>, vector<128x128xf32>,
      %c0_67 = arith.constant 0 : index
      %c0_68 = arith.constant 0 : index
      %106 = vector.load %arg11[%c0_67, %c0_68] : memref<128x128xf32, #tpu.memory_space<vmem>>, vector<128x128xf32>
      %107 = vector.extract_strided_slice %106 {offsets = [127, 0], sizes = [1, 128], strides = [1, 1]} : vector<128x128xf32> to vector<1x128xf32>
      %108 = vector.extract_strided_slice %106 {offsets = [0, 0], sizes = [127, 128], strides = [1, 1]} : vector<128x128xf32> to vector<127x128xf32>
      %109 = tpu.concatenate %107, %108 in 0 : vector<1x128xf32>, vector<127x128xf32> -> vector<128x128xf32>
      %c0_69 = arith.constant 0 : index
      %c0_70 = arith.constant 0 : index
      %110 = vector.load %arg11[%c0_69, %c0_70] : memref<128x128xf32, #tpu.memory_space<vmem>>, vector<128x128xf32>
      tpu.vector_store %arg11[%c0_69, %c0_70], %109 {strides = array<i32>} : memref<128x128xf32, #tpu.memory_space<vmem>>, vector<128x128xf32>,
      %111 = vector.extract_strided_slice %arg16 {offsets = [1, 0], sizes = [15, 128], strides = [1, 1]} : vector<16x128xf32> to vector<15x128xf32>
      %112 = vector.extract_strided_slice %arg16 {offsets = [0, 0], sizes = [1, 128], strides = [1, 1]} : vector<16x128xf32> to vector<1x128xf32>
      %113 = tpu.concatenate %111, %112 in 0 : vector<15x128xf32>, vector<1x128xf32> -> vector<16x128xf32>
      scf.yield %113 : vector<16x128xf32>
    }
    %c16_i32_39 = arith.constant 16 : i32
    %68 = arith.negf %54 : vector<128x128xf32>
    %69 = math.exp %68 : vector<128x128xf32>
    %cst_40 = arith.constant 1.000000e+00 : f32
    %70 = vector.broadcast %cst_40 : f32 to vector<128x128xf32>
    %71 = arith.addf %70, %69 : vector<128x128xf32>
    %72 = arith.divf %70, %71 : vector<128x128xf32>
    %c0_41 = arith.constant 0 : index
    %c0_42 = arith.constant 0 : index
    %73 = vector.load %arg14[%c0_41, %c0_42] : memref<128x128xf32, #tpu.memory_space<vmem>>, vector<128x128xf32>
    %c0_43 = arith.constant 0 : index
    %c0_44 = arith.constant 0 : index
    %74 = vector.load %arg13[%c0_43, %c0_44] : memref<128x128xf32, #tpu.memory_space<vmem>>, vector<128x128xf32>
    %75 = tpu.reciprocal %74 {approx = true} : vector<128x128xf32> -> vector<128x128xf32>
    %76 = arith.mulf %73, %75 : vector<128x128xf32>
    %77 = arith.mulf %72, %76 : vector<128x128xf32>
    %78 = arith.truncf %77 : vector<128x128xf32> to vector<128x128xbf16>
    %c0_45 = arith.constant 0 : index
    %c0_46 = arith.constant 0 : index
    %79 = vector.load %arg9[%c0_45, %c0_46] : memref<128x128xbf16, #tpu.memory_space<vmem>>, vector<128x128xbf16>
    %cst_47 = arith.constant dense<0.000000e+00> : vector<128x128xf32>
    %80 = tpu.matmul %78, %79, %cst_47 {dimension_numbers = #tpu.dot_dimension_numbers<[1], [0], [0], [1], [0, 0, 1, 1], [], []>} : vector<128x128xbf16>, vector<128x128xbf16>, vector<128x128xf32> -> vector<128x128xf32>
    %c0_48 = arith.constant 0 : index
    %c0_49 = arith.constant 0 : index
    %81 = vector.load %arg10[%c0_48, %c0_49] : memref<128x128xf32, #tpu.memory_space<vmem>>, vector<128x128xf32>
    tpu.vector_store %arg10[%c0_48, %c0_49], %80 {strides = array<i32>} : memref<128x128xf32, #tpu.memory_space<vmem>>, vector<128x128xf32>,
    return
  }
  func.func @transform_0(%arg0: i32) -> (i32, i32) {
    %c0_i32 = arith.constant 0 : i32
    %c0_i32_0 = arith.constant 0 : i32
    return %arg0, %c0_i32 : i32, i32
  }
  func.func @transform_1(%arg0: i32) -> (i32, i32) {
    %c0_i32 = arith.constant 0 : i32
    %c0_i32_0 = arith.constant 0 : i32
    %c0_i32_1 = arith.constant 0 : i32
    return %c0_i32, %c0_i32_0 : i32, i32
  }
  func.func @transform_2(%arg0: i32) -> (i32, i32) {
    %c0_i32 = arith.constant 0 : i32
    %c0_i32_0 = arith.constant 0 : i32
    %c0_i32_1 = arith.constant 0 : i32
    return %c0_i32, %c0_i32_0 : i32, i32
  }
  func.func @transform_3(%arg0: i32) -> (i32, i32) {
    %c0_i32 = arith.constant 0 : i32
    %c0_i32_0 = arith.constant 0 : i32
    %c0_i32_1 = arith.constant 0 : i32
    return %c0_i32, %c0_i32_0 : i32, i32
  }
  func.func @transform_4(%arg0: i32) -> (i32, i32) {
    %c0_i32 = arith.constant 0 : i32
    %c0_i32_0 = arith.constant 0 : i32
    %c0_i32_1 = arith.constant 0 : i32
    return %c0_i32, %c0_i32_0 : i32, i32
  }
  func.func @transform_5(%arg0: i32) -> (i32, i32) {
    %c0_i32 = arith.constant 0 : i32
    %c0_i32_0 = arith.constant 0 : i32
    %c0_i32_1 = arith.constant 0 : i32
    return %c0_i32, %c0_i32_0 : i32, i32
  }
  func.func @transform_6(%arg0: i32) -> (i32, i32) {
    %c0_i32 = arith.constant 0 : i32
    %c0_i32_0 = arith.constant 0 : i32
    %c0_i32_1 = arith.constant 0 : i32
    return %c0_i32, %c0_i32_0 : i32, i32
  }
  func.func @transform_7(%arg0: i32) -> (i32, i32) {
    %c0_i32 = arith.constant 0 : i32
    %c0_i32_0 = arith.constant 0 : i32
    %c0_i32_1 = arith.constant 0 : i32
    return %c0_i32, %c0_i32_0 : i32, i32
  }
  func.func @transform_8(%arg0: i32) -> (i32, i32) {
    %c0_i32 = arith.constant 0 : i32
    %c0_i32_0 = arith.constant 0 : i32
    %c0_i32_1 = arith.constant 0 : i32
    return %c0_i32, %c0_i32_0 : i32, i32
  }
  func.func @transform_9(%arg0: i32) -> (i32, i32) {
    %c0_i32 = arith.constant 0 : i32
    %c0_i32_0 = arith.constant 0 : i32
    return %arg0, %c0_i32 : i32, i32
  }
}

</mosaic_0001>

<bundles_post_ra>
// kernel: tpu_custom_call.1
= control target key start
LH: loop header
LB: loop body
LE: loop exit
PB: predicated region body
PF: predicated region fallthrough
CT: control target
= control target key end

     0   :  { %s4464_s0 = inlined_call_operand.hbm [shape: f32[256,128], index: 0, kind: input, shape index: {}]   ;;  %s4465_s1 = inlined_call_operand.hbm [shape: f32[16,128], index: 1, kind: input, shape index: {}]   ;;  %s4466_s2 = inlined_call_operand.vmem [shape: f32[1,128], index: 2, kind: input, shape index: {}]   ;;  %s4467_s3 = inlined_call_operand.vmem [shape: f32[1,128], index: 3, kind: input, shape index: {}]   ;;  %s4468_s4 = inlined_call_operand.vmem [shape: f32[1,128], index: 4, kind: input, shape index: {}]   ;;  %s4469_s5 = inlined_call_operand.hbm [shape: bf16[128,128], index: 5, kind: input, shape index: {}]   ;;  %s4470_s6 = inlined_call_operand.hbm [shape: bf16[128,128], index: 6, kind: input, shape index: {}]   ;;  %s4471_s7 = inlined_call_operand.hbm [shape: bf16[128,128], index: 7, kind: input, shape index: {}]   ;;  %s4472_s8 = inlined_call_operand.hbm [shape: bf16[128,128], index: 8, kind: input, shape index: {}]   ;;  %s4473_s9 = inlined_call_operand.hbm [shape: f32[256,128], index: 9, kind: output, shape index: {}]  }
   0x1   :  { %4509 = sst [smem:[#allocation61_spill]] %s4465_s1 }
   0x2   :  { %4510 = sst [smem:[#allocation62_spill]] %s4469_s5 }
   0x3   :  { %4511 = sst [smem:[#allocation63_spill]] %s4470_s6 }
   0x4   :  { %14 = vsyncpa [#allocation7], 0 }
   0x5   :  { %16 = vsyncpa [#allocation7 + $0x1], 0 }
   0x6   :  { %17 = vsyncpa [#allocation10], 0 }
   0x7   :  { %18 = vsyncpa [#allocation13], 0 }
   0x8   :  { %19 = vsyncpa [#allocation16], 0 }
   0x9   :  { %20 = vsyncpa [#allocation8], 0 }
   0xa   :  { %22 = vsyncpa [#allocation8 + $0x1], 0  ;;  %s3383_s30 = smov 0   ;;  %s3385_s10 = smov 0  }
   0xb   :  { %s3387_s11 = smov 0   ;;  %s3389_s12 = smov 0  }
   0xc LB: > { %s3318_s13 = smov [#allocation9]   ;;  %s3404_s15 = sadd.s32 4294967295, %s3304_s12   ;;  %s3304_s12 = sphi %s3389_s12, %s4649_s12   ;;  %s3300_s11 = sphi %s3387_s11, %s4648_s11   ;;  %s3296_s10 = sphi %s3385_s10, %s4647_s10   ;;  %s3292_s30 = sphi %s3383_s30, %s4646_s30  }
   0xd   : > { %s265_s14 = sshll.u32 %s3318_s13, 4  ;;  %p2504_p0 = scmp.ge.s32.totalorder %s3304_s12, 1  ;;  %s266_s14 = int_to_ptr.vmem [resolvable:$true] %s265_s14 }
   0xe   : > { %p4476_p1 = scmp.eq.s32.totalorder %s3404_s15, 0  ;;  %p253_p2 = scmp.lt.s32.totalorder %s3304_s12, 3 }
   0xf   : > { %s3319_s18 = smov [#allocation12]   ;;  %s3320_s20 = smov [#allocation11]  }
  0x10   : > { %p3409_p3 = pnand %p2504_p0, %p253_p2  ;;  %s300_s19 = sshll.u32 %s3319_s18, 4  ;;  %s3422_s19 = int_to_ptr.vmem [resolvable:$true] %s300_s19 }
  0x11   : > { %s3424_s21 = sshll.u32 %s3320_s20, 4  ;;  %s3069_s23 = scalar_lea.vmem %s266_s14, 256  ;;  %s288_s21 = int_to_ptr.vmem [resolvable:$true] %s3424_s21 }
  0x12   : > { %s4512_s16 = scalar_select %p3409_p3, 1, 0 }
  0x13   : > { %p2793_p5 = pneg %p3409_p3  ;;  %p3070_p8 = scmp.ne.s32.totalorder %s266_s14, %s3069_s23 }
  0x14   : > { %p3077_p11 = scmp.lt.s32.totalorder %s266_s14, %s266_s14  ;;  %p3078_p12 = scmp.lt.s32.totalorder %s3069_s23, %s3069_s23 }
  0x15   : > { %p3418_p6 = pnand %p2793_p5, %p4476_p1 }
  0x16   : > { %p3079_p13 = por %p3078_p12, %p3077_p11 }
  0x17   : > { %p3428_p7 = pneg %p3418_p6 }
  0x19   : > { %p3072_p9 = pnand %p3070_p8, %p3428_p7 }
  0x1b   : > { %p3073_p10 = pneg %p3072_p9 }
  0x1d   : > { %p3080_p0 = pnand %p3079_p13, %p3073_p10 }
  0x1f   : > { %3083 = shalt.err (!%p3080_p0)
}
  0x20   : > { %s4474_s24 = smov 128   ;;  %s4475_s25 = smov 8  }
  0x21   : > { %s4515_s1 = sld [smem:[#allocation61_spill]]  ;;  %s3095_s28 = scalar_lea.vmem %s3422_s19, 1024 }
  0x22   : > { %p3096_p2 = scmp.ne.s32.totalorder %s3422_s19, %s3095_s28  ;;  %p3103_p9 = scmp.lt.s32.totalorder %s3422_s19, %s3422_s19 }
  0x23   : > { %p3104_p10 = scmp.lt.s32.totalorder %s3095_s28, %s3095_s28 }
  0x24   : > { %p3098_p5 = pnand %p3096_p2, %p3428_p7 }
  0x25   : > { %p3105_p11 = por %p3104_p10, %p3103_p9 }
  0x26   : > { %p3099_p8 = pneg %p3098_p5 }
  0x27   : > { %2796 = dma.hbm_to_vmem [thread:$0]  (!%p3418_p6), %s4515_s1, 256, %s266_s14, [#allocation10], %s4474_s24, %s4474_s24, %s4475_s25  }
  0x28   : > { %p3106_p12 = pnand %p3105_p11, %p3099_p8 }
  0x2a   : > { %3109 = shalt.err (!%p3106_p12)
}
  0x2b   : > { %s3323_s29 = smov 64   ;;  %s3324_s13 = smov 4  }
  0x2c   : > { %s4516_s6 = sld [smem:[#allocation63_spill]]  ;;  %s3121_s20 = scalar_lea.vmem %s288_s21, 1024 }
  0x2d   : > { %p3122_p13 = scmp.ne.s32.totalorder %s288_s21, %s3121_s20  ;;  %p3129_p5 = scmp.lt.s32.totalorder %s288_s21, %s288_s21 }
  0x2e   : > { %p3130_p8 = scmp.lt.s32.totalorder %s3121_s20, %s3121_s20 }
  0x2f   : > { %p3124_p0 = pnand %p3122_p13, %p3428_p7 }
  0x30   : > { %p3131_p9 = por %p3130_p8, %p3129_p5 }
  0x31   : > { %p3125_p2 = pneg %p3124_p0 }
  0x32   : > { %2802 = dma.hbm_to_vmem [thread:$0]  (!%p3418_p6), %s4516_s6, 1024, %s3422_s19, [#allocation13], %s3323_s29, %s3323_s29, %s3324_s13  }
  0x33   : > { %p3132_p10 = pnand %p3131_p9, %p3125_p2 }
  0x35   : > { %3135 = shalt.err (!%p3132_p10)
}
  0x36   : > { %s4517_s5 = sld [smem:[#allocation62_spill]]  ;;  %s3325_s19 = smov [#allocation14]  }
  0x37   : > { %s313_s27 = sshll.u32 %s3325_s19, 4  ;;  %s3326_s28 = smov [#allocation15]   ;;  %s314_s27 = int_to_ptr.vmem [resolvable:$true] %s313_s27 }
  0x38   : > { %s326_s14 = sshll.u32 %s3326_s28, 4  ;;  %s3147_s18 = scalar_lea.vmem %s314_s27, 1024  ;;  %s327_s14 = int_to_ptr.vmem [resolvable:$true] %s326_s14 }
  0x39   : > { %p3148_p11 = scmp.ne.s32.totalorder %s314_s27, %s3147_s18  ;;  %p3155_p0 = scmp.lt.s32.totalorder %s314_s27, %s314_s27 }
  0x3a   : > { %p3156_p2 = scmp.lt.s32.totalorder %s3147_s18, %s3147_s18 }
  0x3b   : > { %p3150_p12 = pnand %p3148_p11, %p3428_p7 }
  0x3c   : > { %2799 = dma.hbm_to_vmem [thread:$0]  (!%p3418_p6), %s4517_s5, 1024, %s288_s21, [#allocation10], %s3323_s29, %s3323_s29, %s3324_s13  }
  0x3d   : > { %p3151_p13 = pneg %p3150_p12  ;;  %p3157_p5 = por %p3156_p2, %p3155_p0 }
  0x3f   : > { %p3158_p8 = pnand %p3157_p5, %p3151_p13 }
  0x41   : > { %3161 = shalt.err (!%p3158_p8)
}
  0x42   : > { %2805 = dma.hbm_to_vmem [thread:$0]  (!%p3418_p6), %s4471_s7, 1024, %s314_s27, [#allocation13], %s3323_s29, %s3323_s29, %s3324_s13  }
  0x43   : > { %s3173_s23 = scalar_lea.vmem %s327_s14, 1024  ;;  %p3181_p12 = scmp.lt.s32.totalorder %s327_s14, %s327_s14 }
  0x44   : > { %p3174_p9 = scmp.ne.s32.totalorder %s327_s14, %s3173_s23  ;;  %p3182_p0 = scmp.lt.s32.totalorder %s3173_s23, %s3173_s23 }
  0x46   : > { %p3176_p10 = pnand %p3174_p9, %p3428_p7  ;;  %p3183_p13 = por %p3182_p0, %p3181_p12 }
  0x48   : > { %p3177_p11 = pneg %p3176_p10 }
  0x4a   : > { %p3184_p2 = pnand %p3183_p13, %p3177_p11 }
  0x4c   : > { %3187 = shalt.err (!%p3184_p2)
}
  0x4d   : > { %2808 = dma.hbm_to_vmem [thread:$0]  (!%p3418_p6), %s4472_s8, 1024, %s327_s14, [#allocation16], %s3323_s29, %s3323_s29, %s3324_s13  }
  0x4e   : > { %s2503_s17 = sadd.s32 4294967294, %s3304_s12   ;;  %s3490_s22 = sadd.s32 1, %s3304_s12  }
  0x4f   : > { %s35_s27 = sadd.s32 1, %s3300_s11  ;;  %s32_s28 = ssub.s32 %s3304_s12, %s3490_s22 }
  0x50   : > { %p42_p7 = scmp.ne.s32.totalorder %s3300_s11, %s3296_s10  ;;  %p33_p5 = scmp.eq.s32.totalorder %s32_s28, 0 }
  0x51   : > { %p43_p8 = scmp.eq.s32.totalorder %s3304_s12, 0  ;;  %p48_p9 = scmp.ne.s32.totalorder %s3296_s10, %s3292_s30 }
  0x52   : > { %p240_p10 = scmp.eq.s32.totalorder %s3404_s15, 1  ;;  %p246_p0 = scmp.eq.s32.totalorder %s2503_s17, 1 }
  0x53   : > { %s3502_s18 = scalar_select %p33_p5, %s3300_s11, %s35_s27  }
  0x54   : > { %p44_p11 = por %p43_p8, %p42_p7  ;;  %p3506_p12 = por %p4476_p1, %p48_p9 }
  0x55   : > { %p3510_p6 = por %p240_p10, %p42_p7  ;;  %p2822_p13 = scmp.lt.s32.totalorder %s3304_s12, 2 }
  0x56   : > { %s4518_s21 = scalar_select %p3506_p12, 1, 0 }
  0x57   : > { %s4519_s29 = scalar_select %p3510_p6, 1, 0 }
  0x58   : > { %s340_s13 = sand.u32 1, %s3300_s11   ;;  %p3516_p2 = por %p246_p0, %p48_p9 }
  0x59   : > { %s2511_s20 = sshll.u32 %s340_s13, 7  ;;  %s2575_s23 = sshll.u32 %s3304_s12, 11 }
  0x5a   : > { %s4520_s14 = scalar_select %p3516_p2, 1, 0 }
  0x5b   : > { %s3524_s27 = scalar_lea.hbm %s4464_s0, %s2575_s23  ;;  %s344_s28 = scalar_lea.vmem [#allocation6], %s2511_s20 }
  0x5c   : > { %s351_s24 = sshll.u32 %s344_s28, 4  ;;  %p3526_p7 = pnand %p2822_p13, %p44_p11  ;;  %s3530_s24 = int_to_ptr.vmem [resolvable:$true] %s351_s24 }
  0x5d   : > { %s3532_s25 = scalar_lea.sflag [#allocation7], %s340_s13  ;;  %s3188_s1 = scalar_lea.hbm %s3524_s27, 2048 }
  0x5e   : > { %p3189_p5 = scmp.ne.s32.totalorder %s3524_s27, %s3188_s1  ;;  %p3190_p8 = pneg %p3526_p7 }
  0x5f   : > { %s3193_s20 = scalar_lea.hbm %s4464_s0, 4096  ;;  %p3194_p11 = scmp.lt.s32.totalorder %s3524_s27, %s4464_s0 }
  0x60   : > { %p3191_p9 = pnand %p3190_p8, %p3189_p5  ;;  %p3195_p0 = scmp.lt.s32.totalorder %s3193_s20, %s3188_s1 }
  0x62   : > { %p3192_p10 = pneg %p3191_p9  ;;  %p3196_p13 = por %p3195_p0, %p3194_p11 }
  0x64   : > { %p3197_p4 = pnand %p3196_p13, %p3192_p10 }
  0x66   : > { %3200 = shalt.err (!%p3197_p4)
}
  0x67   : > { %s3201_s13 = scalar_lea.vmem %s3530_s24, 2048  ;;  %s3327_s5 = smov [#allocation6]  }
  0x68   : > { %p3202_p1 = scmp.ne.s32.totalorder %s3530_s24, %s3201_s13  ;;  %s3206_s6 = sshll.u32 %s3327_s5, 4  ;;  %s3207_s6 = int_to_ptr.vmem [resolvable:$false] %s3206_s6 }
  0x69   : > { %s3208_s23 = scalar_lea.vmem %s3207_s6, 4096  ;;  %p3209_p9 = scmp.lt.s32.totalorder %s3530_s24, %s3207_s6 }
  0x6a   : > { %p3204_p2 = pnand %p3202_p1, %p3190_p8  ;;  %p3210_p6 = scmp.lt.s32.totalorder %s3208_s23, %s3201_s13 }
  0x6c   : > { %p3205_p5 = pneg %p3204_p2  ;;  %p3211_p12 = por %p3210_p6, %p3209_p9 }
  0x6e   : > { %p3212_p3 = pnand %p3211_p12, %p3205_p5 }
  0x70   : > { %3215 = shalt.err (!%p3212_p3)
}
  0x71   : > { %s4522_s1 = smov 8   ;;  %s4523_s26 = smov 128  }
  0x72   : > { %2812 = dma.hbm_to_vmem [thread:$0]  (!%p3526_p7), %s3524_s27, 2048, %s3530_s24, %s3532_s25, %s4523_s26, %s4523_s26, %s4522_s1  }
  0x73   : > { %p4524_p1 = scmp.ne.s32.totalorder %s4512_s16, 0 }
  0x75   : > { %363 = sbr.rel (%p4524_p1) target bundleno = 763 (0x2fb), region = 56 }
  0x7a   : > { %s3559_s5 = sand.u32 1, %s3296_s10   ;;  %p4525_p3 = scmp.ne.s32.totalorder %s4518_s21, 0 }
  0x7b   : > { %s2515_s6 = sshll.u32 %s3559_s5, 7  ;;  %s366_s20 = scalar_lea.sflag [#allocation7], %s3559_s5 }
  0x7c   : > { %s3565_s17 = scalar_lea.vmem [#allocation6], %s2515_s6 }
  0x7d   : > { %3271 = dma.done.wait (%p4525_p3), %s366_s20, 2048  }
  0x7e   : > { %3273 = vsyncadd (%p4525_p3), %s366_s20, 4294965248  ;;  %p4526_p4 = scmp.eq.s32.totalorder %s3404_s15, 0 }
  0x80   : > { %3275 = dma.done.wait (%p4526_p4), [#allocation10], 1280   ;;  %p4527_p12 = pmov %p4526_p4 }
  0x81   : > { %p4528_p6 = pmov %p4526_p4 }
  0x82   : > { %3277 = vsyncadd (%p4527_p12), [#allocation10], 4294966016 }
  0x83   : > { %3279 = dma.done.wait (%p4528_p6), [#allocation13], 2048   ;;  %p4529_p2 = pmov %p4526_p4 }
  0x85   : > { %3281 = vsyncadd (%p4529_p2), [#allocation13], 4294965248  ;;  %p4530_p7 = pmov %p4529_p2 }
  0x86   : > { %p4531_p8 = pmov %p4529_p2 }
  0x87   : > { %3283 = dma.done.wait (%p4530_p7), [#allocation16], 1024  }
  0x88   : > { %3285 = vsyncadd (%p4531_p8), [#allocation16], 4294966272  ;;  %v443_v0 = vlaneseq  ;;  %v3328_v1 = vmov 1e-09   ;;  %v3329_v2 = vmov 0.0   ;;  %v3612_v15 = vld [vmem:[#allocation9] sm:$0xff]  }
  0x89   : > { %1521 = vst [vmem:[#allocation4 + $0x8] sm:$0xff] %v3328_v1  ;;  %1522 = vst [vmem:[#allocation4] sm:$0xff] %v3328_v1  ;;  %v3614_v16 = vld [vmem:[#allocation9 + $0x8] sm:$0xff]   ;;  %v2899_v21 = vld [vmem:[#allocation11 + $0x30] sm:$0xff]   ;;  %vm670_vm0 = vcmask 1040384   ;;  %s4042_s28 = scalar_lea.vmem [#allocation17], %s2515_s6 }
  0x8a   : > { %1523 = vst [vmem:[#allocation4 + $0x48] sm:$0xff] %v3328_v1  ;;  %1524 = vst [vmem:[#allocation4 + $0x60] sm:$0xff] %v3328_v1  ;;  %v3583_v3 = vshrl.u32 %v443_v0, 7  ;;  %v2898_v19 = vld [vmem:[#allocation11 + $0x38] sm:$0xff]   ;;  %v2900_v24 = vld [vmem:[#allocation11 + $0x28] sm:$0xff]   ;;  %s4050_s13 = smov 0  }
  0x8b   : > { %1525 = vst [vmem:[#allocation4 + $0x68] sm:$0xff] %v3328_v1  ;;  %1526 = vst [vmem:[#allocation4 + $0x18] sm:$0xff] %v3328_v1  ;;  %2641 = vmatprep.subr.bf16.mxu0 %v2898_v19  ;;  %v2903_v26 = vld [vmem:[#allocation12 + $0x38] sm:$0xff]   ;;  %v2905_v29 = vld [vmem:[#allocation12 + $0x30] sm:$0xff]  }
  0x8c   : > { %1527 = vst [vmem:[#allocation4 + $0x10] sm:$0xff] %v3328_v1  ;;  %1528 = vst [vmem:[#allocation4 + $0x38] sm:$0xff] %v3328_v1  ;;  %v3586_v4 = vadd.s32 8, %v3583_v3  ;;  %v3589_v5 = vadd.s32 24, %v3583_v3  ;;  %v3592_v6 = vadd.s32 40, %v3583_v3  ;;  %v3595_v7 = vadd.s32 56, %v3583_v3  ;;  %2642 = vmatpush3.bf16.msra.mxu0 %v2898_v19  ;;  %2673 = vmatprep.subr.bf16.mxu1 %v2903_v26 }
  0x8d   : > { %1529 = vst [vmem:[#allocation4 + $0x40] sm:$0xff] %v3328_v1  ;;  %1530 = vst [vmem:[#allocation4 + $0x28] sm:$0xff] %v3328_v1  ;;  %v3598_v8 = vadd.s32 72, %v3583_v3  ;;  %v3601_v9 = vadd.s32 88, %v3583_v3  ;;  %v3604_v10 = vadd.s32 104, %v3583_v3  ;;  %v3607_v11 = vadd.s32 120, %v3583_v3  ;;  %2643 = vmatprep.subr.bf16.mxu0 %v2899_v21  ;;  %2674 = vmatpush3.bf16.msra.mxu1 %v2903_v26 }
  0x8e   : > { %1531 = vst [vmem:[#allocation4 + $0x70] sm:$0xff] %v3328_v1  ;;  %1532 = vst [vmem:[#allocation4 + $0x20] sm:$0xff] %v3328_v1  ;;  %v4484_v25 = vand.u32 15, %v3583_v3  ;;  %v3623_v27 = vadd.s32 16, %v3583_v3  ;;  %v3626_v28 = vadd.s32 32, %v3583_v3  ;;  %v2901_v31 = vld [vmem:[#allocation11 + $0x20] sm:$0xff]   ;;  %2675 = vmatprep.subr.bf16.mxu1 %v2905_v29 }
  0x8f   : > { %1533 = vst [vmem:[#allocation4 + $0x58] sm:$0xff] %v3328_v1  ;;  %1534 = vst [vmem:[#allocation4 + $0x30] sm:$0xff] %v3328_v1  ;;  %v2907_v33 = vld [vmem:[#allocation12 + $0x28] sm:$0xff]   ;;  %v2902_v35 = vld [vmem:[#allocation11 + $0x18] sm:$0xff]   ;;  %v3637_v36 = vsub.s32 0, %v3583_v3  ;;  %v3649_v40 = vadd.s32 48, %v3583_v3 }
  0x90   : > { %1535 = vst [vmem:[#allocation4 + $0x50] sm:$0xff] %v3328_v1  ;;  %1536 = vst [vmem:[#allocation4 + $0x78] sm:$0xff] %v3328_v1  ;;  %2644 = vmatpush3.bf16.msra.mxu0 %v2899_v21  ;;  %v4483_v30 = vand.u32 15, %v3623_v27  ;;  %v4482_v32 = vand.u32 15, %v3626_v28  ;;  %vm3632_vm1 = vcmp.eq.s32.totalorder %v4484_v25, 0  ;;  %v2909_v37 = vld [vmem:[#allocation12 + $0x20] sm:$0xff]  }
  0x91   : > { %1537 = vst [vmem:[#allocation5 + $0x18] sm:$0xff] %v3329_v2  ;;  %1538 = vst [vmem:[#allocation5 + $0x38] sm:$0xff] %v3329_v2  ;;  %2645 = vmatprep.subr.bf16.mxu0 %v2900_v24  ;;  %v3640_v38 = vld [vmem:[%s3565_s17] sm:$0xff]  ;;  %2676 = vmatpush3.bf16.msra.mxu1 %v2905_v29  ;;  %v3652_v41 = vld [vmem:[%s3565_s17 + $0x8] sm:$0xff]  ;;  %v3676_v51 = vadd.s32 64, %v3583_v3  ;;  %v4480_v57 = vand.u32 15, %v3649_v40 }
  0x92   : > { %1539 = vst [vmem:[#allocation5 + $0x48] sm:$0xff] %v3329_v2  ;;  %1540 = vst [vmem:[#allocation5 + $0x40] sm:$0xff] %v3329_v2  ;;  %vm3644_vm2 = vcmp.eq.s32.totalorder %v4483_v30, 0  ;;  %v3655_v42 = vld [vmem:[%s3565_s17 + $0x78] sm:$0xff]  ;;  %v671_v43 = vrot.slane %v3640_v38, 7  ;;  %vm3663_vm3 = vcmp.eq.s32.totalorder %v4482_v32, 0  ;;  %2677 = vmatprep.subr.bf16.mxu1 %v2907_v33 }
  0x93   : > { %1541 = vst [vmem:[#allocation5 + $0x28] sm:$0xff] %v3329_v2  ;;  %1542 = vst [vmem:[#allocation5] sm:$0xff] %v3329_v2  ;;  %v798_v44 = vld [vmem:[%s4466_s2] sm:$0x1]  ;;  %v4486_v46 = vrot.slane %v3655_v42, 7  ;;  %v672_v47 = vrot.slane %v3652_v41, 7 }
  0x94   : > { %1543 = vst [vmem:[#allocation5 + $0x8] sm:$0xff] %v3329_v2  ;;  %1544 = vst [vmem:[#allocation5 + $0x70] sm:$0xff] %v3329_v2  ;;  %2646 = vmatpush3.bf16.msra.mxu0 %v2900_v24  ;;  %v799_v48 = vsub.f32 1.0, %v798_v44  ;;  %v3670_v49 = vld [vmem:[%s3565_s17 + $0x10] sm:$0xff]  ;;  %v3673_v50 = vld [vmem:[%s3565_s17 + $0x18] sm:$0xff]  ;;  %vm3719_vm4 = vcmp.eq.s32.totalorder %v4480_v57, 0 }
  0x95   : > { %1545 = vst [vmem:[#allocation5 + $0x68] sm:$0xff] %v3329_v2  ;;  %1546 = vst [vmem:[#allocation5 + $0x60] sm:$0xff] %v3329_v2  ;;  %2647 = vmatprep.subr.bf16.mxu0 %v2901_v31  ;;  %v674_v52 = vrot.slane %v3670_v49, 7  ;;  %v676_v53 = vrot.slane %v3673_v50, 7  ;;  %v673_v54 = vsel %vm670_vm0, %v671_v43, %v672_v47  ;;  %v717_v55 = vsel %vm670_vm0, %v4486_v46, %v671_v43  ;;  %v2904_v58 = vld [vmem:[#allocation11 + $0x10] sm:$0xff]   ;;  %v3712_v26 = vld [vmem:[%s3565_s17 + $0x28] sm:$0xff] }
  0x96   : > { %1547 = vst [vmem:[#allocation5 + $0x78] sm:$0xff] %v3329_v2  ;;  %1548 = vst [vmem:[#allocation5 + $0x30] sm:$0xff] %v3329_v2  ;;  %v3685_v56 = vrot.slane %v799_v48, %v3637_v36  ;;  %2678 = vmatpush3.bf16.msra.mxu1 %v2907_v33  ;;  %v766_v59 = vsel %vm3632_vm1, 0.0, %v717_v55  ;;  %v3691_v60 = vsub.f32 %v673_v54, %v3652_v41  ;;  %v3709_v24 = vld [vmem:[%s3565_s17 + $0x20] sm:$0xff]  ;;  %v3715_v29 = vld [vmem:[%s3565_s17 + $0x30] sm:$0xff]  ;;  %v3724_v33 = vadd.s32 80, %v3583_v3 }
  0x97   : > { %1549 = vst [vmem:[#allocation5 + $0x50] sm:$0xff] %v3329_v2  ;;  %1550 = vst [vmem:[#allocation5 + $0x20] sm:$0xff] %v3329_v2  ;;  %v675_v61 = vsel %vm670_vm0, %v672_v47, %v674_v52  ;;  %v677_v62 = vsel %vm670_vm0, %v674_v52, %v676_v53  ;;  %2679 = vmatprep.subr.bf16.mxu1 %v2909_v37  ;;  %v3696_v63 = vsub.f32 %v766_v59, %v3640_v38  ;;  %v2906_v34 = vld [vmem:[#allocation11 + $0x8] sm:$0xff]   ;;  %v2908_v20 = vld [vmem:[#allocation11] sm:$0xff]  }
  0x98   : > { %1551 = vst [vmem:[#allocation5 + $0x58] sm:$0xff] %v3329_v2  ;;  %1552 = vst [vmem:[#allocation5 + $0x10] sm:$0xff] %v3329_v2  ;;  %2648 = vmatpush3.bf16.msra.mxu0 %v2901_v31  ;;  %v768_v0 = vsel %vm3644_vm2, 0.0, %v675_v61  ;;  %v3701_v1 = vsub.f32 %v677_v62, %v3673_v50  ;;  %v2911_v2 = vld [vmem:[#allocation12 + $0x18] sm:$0xff]   ;;  %v807_v19 = vmul.f32 %v3685_v56, %v3691_v60  ;;  %v678_v44 = vrot.slane %v3709_v24, 7  ;;  %v3733_v48 = vld [vmem:[%s3565_s17 + $0x38] sm:$0xff] }
  0x99   : > { %4532 = vst [vmem:[#allocation23_spill] sm:$0xff] %v3583_v3  ;;  %4533 = vst [vmem:[#allocation24_spill] sm:$0xff] %v3586_v4  ;;  %2649 = vmatprep.subr.bf16.mxu0 %v2902_v35  ;;  %v3706_v21 = vsub.f32 %v768_v0, %v3670_v49  ;;  %v806_v39 = vmul.f32 %v3685_v56, %v3696_v63  ;;  %v680_v47 = vrot.slane %v3712_v26, 7  ;;  %v682_v54 = vrot.slane %v3715_v29, 7  ;;  %v2913_v61 = vld [vmem:[#allocation12 + $0x10] sm:$0xff]   ;;  %v3773_v31 = vld [vmem:[%s3565_s17 + $0x50] sm:$0xff] }
  0x9a   : > { %4534 = vst [vmem:[#allocation25_spill] sm:$0xff] %v3589_v5  ;;  %4535 = vst [vmem:[#allocation26_spill] sm:$0xff] %v3592_v6  ;;  %v809_v43 = vmul.f32 %v3685_v56, %v3701_v1  ;;  %v823_v52 = vadd.f32 %v807_v19, %v3652_v41  ;;  %2680 = vmatpush3.bf16.msra.mxu1 %v2909_v37  ;;  %v684_v55 = vrot.slane %v3733_v48, 7  ;;  %v4481_v23 = vand.u32 15, %v3676_v51  ;;  %v3760_v45 = vld [vmem:[%s3565_s17 + $0x40] sm:$0xff]  ;;  %v3792_v17 = vld [vmem:[%s3565_s17 + $0x58] sm:$0xff] }
  0x9b   : > { %4536 = vst [vmem:[#allocation27_spill] sm:$0xff] %v3595_v7  ;;  %4537 = vst [vmem:[#allocation28_spill] sm:$0xff] %v3598_v8  ;;  %v822_v59 = vadd.f32 %v806_v39, %v3640_v38  ;;  %2681 = vmatprep.subr.bf16.mxu1 %v2911_v2  ;;  %v679_v62 = vsel %vm670_vm0, %v676_v53, %v678_v44  ;;  %v681_v0 = vsel %vm670_vm0, %v678_v44, %v680_v47  ;;  %v2910_v13 = vld [vmem:[#allocation14 + $0x38] sm:$0xff]   ;;  %v2917_v30 = vld [vmem:[#allocation12] sm:$0xff]  }
  0x9c   : > { %4538 = vst [vmem:[#allocation29_spill] sm:$0xff] %v3601_v9  ;;  %4539 = vst [vmem:[#allocation30_spill] sm:$0xff] %v3604_v10  ;;  %2650 = vmatpush3.bf16.msra.mxu0 %v2902_v35  ;;  %v808_v35 = vmul.f32 %v3685_v56, %v3706_v21  ;;  %v3745_v37 = vadd.f32 %v809_v43, %v3673_v50  ;;  %v770_v19 = vsel %vm3663_vm3, 0.0, %v679_v62  ;;  %vm3783_vm5 = vcmp.eq.s32.totalorder %v4481_v23, 0  ;;  %v3834_v12 = vld [vmem:[%s3565_s17 + $0x68] sm:$0xff]  ;;  %v2912_v10 = vld [vmem:[#allocation14 + $0x30] sm:$0xff]  }
  0x9d   : > { %4540 = vst [vmem:[#allocation31_spill] sm:$0xff] %v3607_v11  ;;  %4541 = vst [vmem:[#allocation32_spill] sm:$0xff] %v3623_v27  ;;  %2651 = vmatprep.subr.bf16.mxu0 %v2904_v58  ;;  %v3750_v22 = vsub.f32 %v681_v0, %v3712_v26  ;;  %v683_v39 = vsel %vm670_vm0, %v680_v47, %v682_v54  ;;  %v918_v53 = vpack.c.bf16 %v823_v52, %v822_v59  ;;  %v2915_v52 = vld [vmem:[#allocation12 + $0x8] sm:$0xff]   ;;  %v3769_v59 = vld [vmem:[%s3565_s17 + $0x48] sm:$0xff] }
  0x9e   : > { %4542 = vst [vmem:[#allocation33_spill] sm:$0xff] %v3626_v28  ;;  %4545 = vst [vmem:[#allocation34_spill] sm:$0xff] %v3637_v36  ;;  %v3754_v44 = vsub.f32 %v770_v19, %v3709_v24  ;;  %v685_v18 = vsel %vm670_vm0, %v682_v54, %v684_v55  ;;  %v772_v43 = vsel %vm3719_vm4, 0.0, %v683_v39  ;;  %v824_v62 = vadd.f32 %v808_v35, %v3670_v49 }
  0x9f   : > { %4548 = vst [vmem:[#allocation35_spill] sm:$0xff] %v3649_v40  ;;  %4551 = vst [vmem:[#allocation36_spill] sm:$0xff] %v3676_v51  ;;  %2682 = vmatpush3.bf16.msra.mxu1 %v2911_v2  ;;  %v3766_v47 = vsub.f32 %v772_v43, %v3715_v29  ;;  %v686_v54 = vrot.slane %v3760_v45, 7  ;;  %2657 = vmatprep.mubr.bf16.mxu0 %v918_v53  ;;  %v3778_v2 = vsub.f32 %v685_v18, %v3733_v48 }
  0xa0   : > { %4554 = vst [vmem:[#allocation37_spill] sm:$0xff] %v3724_v33  ;;  %2652 = vmatpush3.bf16.msra.mxu0 %v2904_v58  ;;  %v811_v58 = vmul.f32 %v3685_v56, %v3750_v22  ;;  %2683 = vmatprep.subr.bf16.mxu1 %v2913_v61  ;;  %v810_v35 = vmul.f32 %v3685_v56, %v3754_v44  ;;  %v688_v0 = vrot.slane %v3769_v59, 7  ;;  %v4485_v18 = vand.u32 15, %v3724_v33 }
  0xa1   : > { %2653 = vmatprep.subr.bf16.mxu0 %v2906_v34  ;;  %v812_v53 = vmul.f32 %v3685_v56, %v3766_v47  ;;  %v687_v43 = vsel %vm670_vm0, %v684_v55, %v686_v54  ;;  %v813_v23 = vmul.f32 %v3685_v56, %v3778_v2  ;;  %v838_v55 = vld [vmem:[%s4467_s3] sm:$0x1]  ;;  %v919_v32 = vpack.c.bf16 %v3745_v37, %v824_v62 }
  0xa2   : > { %v827_v39 = vadd.f32 %v811_v58, %v3712_v26  ;;  %v826_v57 = vadd.f32 %v810_v35, %v3709_v24  ;;  %v689_v14 = vsel %vm670_vm0, %v686_v54, %v688_v0  ;;  %v774_v58 = vsel %vm3783_vm5, 0.0, %v687_v43 }
  0xa3   : > { %2684 = vmatpush3.bf16.msra.mxu1 %v2913_v61  ;;  %v3809_v35 = vsub.f32 %v689_v14, %v3769_v59  ;;  %v690_v54 = vrot.slane %v3773_v31, 7  ;;  %v3813_v19 = vadd.f32 %v812_v53, %v3715_v29  ;;  %v3816_v43 = vadd.f32 %v813_v23, %v3733_v48  ;;  %v3826_v14 = vld [vmem:[%s3565_s17 + $0x60] sm:$0xff] }
  0xa4   : > { %2654 = vmatpush3.bf16.msra.mxu0 %v2906_v34  ;;  %v3806_v34 = vsub.f32 %v774_v58, %v3760_v45  ;;  %2685 = vmatprep.subr.bf16.mxu1 %v2915_v52  ;;  %v692_v37 = vrot.slane %v3792_v17, 7  ;;  %vm3821_vm6 = vcmp.eq.s32.totalorder %v4485_v18, 0  ;;  %v839_v58 = vsub.f32 1.0, %v838_v55 }
  0xa5   : > { %2655 = vmatprep.subr.bf16.mxu0 %v2908_v20  ;;  %v815_v53 = vmul.f32 %v3685_v56, %v3809_v35  ;;  %v691_v23 = vsel %vm670_vm0, %v688_v0, %v690_v54  ;;  %v920_v25 = vpack.c.bf16 %v827_v39, %v826_v57  ;;  %v3840_v11 = vadd.s32 96, %v3583_v3 }
  0xa6   : > { %v814_v62 = vmul.f32 %v3685_v56, %v3806_v34  ;;  %v693_v18 = vsel %vm670_vm0, %v690_v54, %v692_v37  ;;  %v776_v46 = vsel %vm3821_vm6, 0.0, %v691_v23  ;;  %v3852_v39 = vrot.slane %v839_v58, %v3637_v36  ;;  %v3877_v58 = vld [vmem:[%s3565_s17 + $0x70] sm:$0xff] }
  0xa7   : > { %4559 = vst [vmem:[#allocation38_spill] sm:$0xff] %v3840_v11  ;;  %2686 = vmatpush3.bf16.msra.mxu1 %v2915_v52  ;;  %v831_v0 = vadd.f32 %v815_v53, %v3769_v59  ;;  %v3845_v55 = vsub.f32 %v776_v46, %v3773_v31  ;;  %v3849_v57 = vsub.f32 %v693_v18, %v3792_v17  ;;  %v4493_v54 = vand.u32 15, %v3840_v11 }
  0xa8   : > { %2656 = vmatpush3.bf16.msra.mxu0 %v2908_v20  ;;  %v830_v9 = vadd.f32 %v814_v62, %v3760_v45  ;;  %v694_v20 = vrot.slane %v3826_v14, 7  ;;  %2687 = vmatprep.subr.bf16.mxu1 %v2917_v30  ;;  %v696_v52 = vrot.slane %v3834_v12, 7  ;;  %v921_v61 = vpack.c.bf16 %v3816_v43, %v3813_v19  ;;  %v2914_v43 = vld [vmem:[#allocation14 + $0x28] sm:$0xff]  }
  0xa9   : > { %2705 = vmatprep.subr.bf16.mxu0 %v2910_v13  ;;  %v816_v46 = vmul.f32 %v3685_v56, %v3845_v55  ;;  %v3862_v18 = vadd.s32 112, %v3583_v3  ;;  %v817_v53 = vmul.f32 %v3685_v56, %v3849_v57  ;;  %v847_v19 = vmul.f32 %v3852_v39, %v3691_v60 }
  0xaa   : > { %v695_v62 = vsel %vm670_vm0, %v692_v37, %v694_v20  ;;  %vm730_vm7 = vcmp.eq.s32.totalorder %v4493_v54, 0  ;;  %v922_v37 = vpack.c.bf16 %v831_v0, %v830_v9  ;;  %v697_v54 = vsel %vm670_vm0, %v694_v20, %v696_v52  ;;  %v2916_v20 = vld [vmem:[#allocation14 + $0x20] sm:$0xff]  }
  0xab   : > { %2658 = vmatmul.mubr.bf16.vlgmr.msra.gmra.mxu0 %v919_v32  ;;  %4560 = vst [vmem:[#allocation39_spill] sm:$0xff] %v3862_v18  ;;  %v846_v32 = vmul.f32 %v3852_v39, %v3696_v63  ;;  %2688 = vmatpush3.bf16.msra.mxu1 %v2917_v30  ;;  %v778_v23 = vsel %vm730_vm7, 0.0, %v695_v62  ;;  %v832_v33 = vadd.f32 %v816_v46, %v3773_v31 }
  0xac   : > { %2706 = vmatpush3.bf16.msra.mxu0 %v2910_v13  ;;  %2661 = vmatprep.mubr.bf16.mxu0 %v920_v25  ;;  %v848_v13 = vmul.f32 %v3852_v39, %v3706_v21  ;;  %v849_v25 = vmul.f32 %v3852_v39, %v3701_v1  ;;  %v863_v11 = vadd.f32 %v847_v19, %v3652_v41  ;;  %v698_v19 = vrot.slane %v3877_v58, 7 }
  0xad   : > { %2707 = vmatprep.subr.bf16.mxu0 %v2912_v10  ;;  %v862_v8 = vadd.f32 %v846_v32, %v3640_v38  ;;  %v3886_v0 = vsub.f32 %v778_v23, %v3826_v14  ;;  %v3889_v51 = vsub.f32 %v697_v54, %v3834_v12  ;;  %v833_v62 = vadd.f32 %v817_v53, %v3792_v17 }
  0xae   : > { %v864_v9 = vadd.f32 %v848_v13, %v3670_v49  ;;  %v865_v30 = vadd.f32 %v849_v25, %v3673_v50  ;;  %v4497_v32 = vand.u32 15, %v3862_v18  ;;  %v850_v54 = vmul.f32 %v3852_v39, %v3754_v44 }
  0xaf   : > { %v1087_v46 = vpack.c.bf16 %v863_v11, %v862_v8  ;;  %v818_v13 = vmul.f32 %v3685_v56, %v3886_v0  ;;  %v819_v25 = vmul.f32 %v3685_v56, %v3889_v51  ;;  %v878_v8 = vld [vmem:[%s4468_s4] sm:$0x1]  ;;  %v4561_v11 = vrot.slane %v3655_v42, 7 }
  0xb0   : > { %2708 = vmatpush3.bf16.msra.mxu0 %v2912_v10  ;;  %v1088_v7 = vpack.c.bf16 %v865_v30, %v864_v9  ;;  %v699_v10 = vsel %vm670_vm0, %v696_v52, %v698_v19  ;;  %vm732_vm8 = vcmp.eq.s32.totalorder %v4497_v32, 0  ;;  %v851_v23 = vmul.f32 %v3852_v39, %v3750_v22 }
  0xb1   : > { %2709 = vmatprep.subr.bf16.mxu0 %v2914_v43  ;;  %2689 = vmatprep.mubr.bf16.mxu1 %v1087_v46  ;;  %v700_v53 = vsel %vm670_vm0, %v698_v19, %v4561_v11  ;;  %v834_v9 = vadd.f32 %v818_v13, %v3826_v14  ;;  %v835_v30 = vadd.f32 %v819_v25, %v3834_v12  ;;  %v780_v40 = vsel %vm732_vm8, 0.0, %v699_v10 }
  0xb2   : > { %2690 = vmatmul.mubr.bf16.vlgmr.msra.gmra.mxu1 %v1088_v7  ;;  %v3914_v46 = vsub.f32 %v700_v53, %v3655_v42  ;;  %v3917_v52 = vsub.f32 %v780_v40, %v3877_v58  ;;  %v866_v19 = vadd.f32 %v850_v54, %v3709_v24  ;;  %v867_v11 = vadd.f32 %v851_v23, %v3712_v26  ;;  %v2918_v7 = vld [vmem:[#allocation14 + $0x18] sm:$0xff]  }
  0xb3   : > { %2662 = vmatmul.mubr.bf16.gmra.mxu0 %v921_v61  ;;  %v879_v32 = vsub.f32 1.0, %v878_v8  ;;  %v852_v13 = vmul.f32 %v3852_v39, %v3766_v47  ;;  %v854_v54 = vmul.f32 %v3852_v39, %v3806_v34  ;;  %v923_v8 = vpack.c.bf16 %v833_v62, %v832_v33 }
  0xb4   : > { %2710 = vmatpush3.bf16.msra.mxu0 %v2914_v43  ;;  %2665 = vmatprep.mubr.bf16.mxu0 %v922_v37  ;;  %v821_v61 = vmul.f32 %v3685_v56, %v3914_v46  ;;  %v853_v43 = vmul.f32 %v3852_v39, %v3778_v2  ;;  %v820_v40 = vmul.f32 %v3685_v56, %v3917_v52 }
  0xb5   : > { %2711 = vmatprep.subr.bf16.mxu0 %v2916_v20  ;;  %v1089_v37 = vpack.c.bf16 %v867_v11, %v866_v19  ;;  %v3930_v25 = vrot.slane %v879_v32, %v3637_v36  ;;  %v868_v10 = vadd.f32 %v852_v13, %v3715_v29  ;;  %v855_v23 = vmul.f32 %v3852_v39, %v3809_v35  ;;  %v2919_v19 = vld [vmem:[#allocation14 + $0x10] sm:$0xff]  }
  0xb6   : > { %v869_v53 = vadd.f32 %v853_v43, %v3733_v48  ;;  %v924_v18 = vpack.c.bf16 %v835_v30, %v834_v9  ;;  %v870_v33 = vadd.f32 %v854_v54, %v3760_v45  ;;  %v836_v62 = vadd.f32 %v820_v40, %v3877_v58  ;;  %v2920_v40 = vld [vmem:[#allocation14 + $0x8] sm:$0xff]  }
  0xb7   : > { %2693 = vmatprep.mubr.bf16.mxu1 %v1089_v37  ;;  %v886_v56 = vmul.f32 %v3930_v25, %v3696_v63  ;;  %v887_v32 = vmul.f32 %v3930_v25, %v3691_v60  ;;  %v837_v13 = vadd.f32 %v821_v61, %v3655_v42  ;;  %v871_v43 = vadd.f32 %v855_v23, %v3769_v59 }
  0xb8   : > { %2712 = vmatpush3.bf16.msra.mxu0 %v2916_v20  ;;  %v1090_v11 = vpack.c.bf16 %v869_v53, %v868_v10  ;;  %v856_v60 = vmul.f32 %v3852_v39, %v3845_v55  ;;  %v857_v30 = vmul.f32 %v3852_v39, %v3849_v57  ;;  %v888_v37 = vmul.f32 %v3930_v25, %v3706_v21 }
  0xb9   : > { %2713 = vmatprep.subr.bf16.mxu0 %v2918_v7  ;;  %v902_v20 = vadd.f32 %v886_v56, %v3640_v38  ;;  %v903_v63 = vadd.f32 %v887_v32, %v3652_v41  ;;  %v1091_v9 = vpack.c.bf16 %v871_v43, %v870_v33  ;;  %v889_v38 = vmul.f32 %v3930_v25, %v3701_v1  ;;  %v2921_v56 = vld [vmem:[#allocation14] sm:$0xff]  }
  0xba   : > { %2694 = vmatmul.mubr.bf16.gmra.mxu1 %v1090_v11  ;;  %v872_v61 = vadd.f32 %v856_v60, %v3773_v31  ;;  %v873_v41 = vadd.f32 %v857_v30, %v3792_v17  ;;  %v860_v10 = vmul.f32 %v3852_v39, %v3917_v52  ;;  %v890_v21 = vmul.f32 %v3930_v25, %v3754_v44 }
  0xbb   : > { %2666 = vmatmul.mubr.bf16.gmra.mxu0 %v923_v8  ;;  %2697 = vmatprep.mubr.bf16.mxu1 %v1091_v9  ;;  %v1256_v54 = vpack.c.bf16 %v903_v63, %v902_v20  ;;  %v859_v8 = vmul.f32 %v3852_v39, %v3889_v51  ;;  %v891_v1 = vmul.f32 %v3930_v25, %v3750_v22 }
  0xbc   : > { %2714 = vmatpush3.bf16.msra.mxu0 %v2918_v7  ;;  %2669 = vmatprep.mubr.bf16.mxu0 %v924_v18  ;;  %v858_v18 = vmul.f32 %v3852_v39, %v3886_v0  ;;  %v925_v7 = vpack.c.bf16 %v837_v13, %v836_v62  ;;  %v1092_v53 = vpack.c.bf16 %v873_v41, %v872_v61 }
  0xbd   : > { %2715 = vmatprep.subr.bf16.mxu0 %v2919_v19  ;;  %v875_v32 = vadd.f32 %v859_v8, %v3834_v12  ;;  %v861_v11 = vmul.f32 %v3852_v39, %v3914_v46  ;;  %v904_v33 = vadd.f32 %v888_v37, %v3670_v49  ;;  %v876_v44 = vadd.f32 %v860_v10, %v3877_v58 }
  0xbe   : > { %v874_v23 = vadd.f32 %v858_v18, %v3826_v14  ;;  %v906_v13 = vadd.f32 %v890_v21, %v3709_v24  ;;  %v907_v43 = vadd.f32 %v891_v1, %v3712_v26  ;;  %v892_v49 = vmul.f32 %v3930_v25, %v3766_v47 }
  0xbf   : > { %v877_v22 = vadd.f32 %v861_v11, %v3655_v42  ;;  %v894_v60 = vmul.f32 %v3930_v25, %v3806_v34  ;;  %v895_v24 = vmul.f32 %v3930_v25, %v3809_v35  ;;  %v897_v34 = vmul.f32 %v3930_v25, %v3849_v57 }
  0xc0   : > { %2716 = vmatpush3.bf16.msra.mxu0 %v2919_v19  ;;  %v905_v19 = vadd.f32 %v889_v38, %v3673_v50  ;;  %v1093_v62 = vpack.c.bf16 %v875_v32, %v874_v23  ;;  %v893_v50 = vmul.f32 %v3930_v25, %v3778_v2  ;;  %v1258_v63 = vpack.c.bf16 %v907_v43, %v906_v13 }
  0xc1   : > { %2717 = vmatprep.subr.bf16.mxu0 %v2920_v40  ;;  %v1094_v20 = vpack.c.bf16 %v877_v22, %v876_v44  ;;  %v908_v26 = vadd.f32 %v892_v49, %v3715_v29  ;;  %v910_v47 = vadd.f32 %v894_v60, %v3760_v45  ;;  %v911_v2 = vadd.f32 %v895_v24, %v3769_v59 }
  0xc2   : > { %2698 = vmatmul.mubr.bf16.gmra.mxu1 %v1092_v53  ;;  %v1257_v39 = vpack.c.bf16 %v905_v19, %v904_v33  ;;  %v909_v9 = vadd.f32 %v893_v50, %v3733_v48  ;;  %v898_v35 = vmul.f32 %v3930_v25, %v3886_v0  ;;  %v899_v29 = vmul.f32 %v3930_v25, %v3889_v51 }
  0xc3   : > { %2670 = vmatmul.mubr.bf16.gmra.mxu0 %v925_v7  ;;  %2701 = vmatprep.mubr.bf16.mxu1 %v1093_v62  ;;  %v1260_v61 = vpack.c.bf16 %v911_v2, %v910_v47  ;;  %v913_v45 = vadd.f32 %v897_v34, %v3792_v17  ;;  %v900_v57 = vmul.f32 %v3930_v25, %v3917_v52 }
  0xc4   : > { %2718 = vmatpush3.bf16.msra.mxu0 %v2920_v40  ;;  %2721 = vmatprep.mubr.bf16.mxu0 %v1256_v54  ;;  %v1259_v30 = vpack.c.bf16 %v909_v9, %v908_v26  ;;  %v896_v40 = vmul.f32 %v3930_v25, %v3845_v55  ;;  %v914_v59 = vadd.f32 %v898_v35, %v3826_v14 }
  0xc5   : > { %2719 = vmatprep.subr.bf16.mxu0 %v2921_v56  ;;  %v915_v55 = vadd.f32 %v899_v29, %v3834_v12  ;;  %v901_v0 = vmul.f32 %v3930_v25, %v3914_v46  ;;  %v916_v51 = vadd.f32 %v900_v57, %v3877_v58 }
  0xc6   : > { %v912_v48 = vadd.f32 %v896_v40, %v3773_v31 }
  0xc7   : > { %v1262_v38 = vpack.c.bf16 %v915_v55, %v914_v59  ;;  %v917_v31 = vadd.f32 %v901_v0, %v3655_v42 }
  0xc8   : > { %2720 = vmatpush3.bf16.msra.mxu0 %v2921_v56  ;;  %v1261_v37 = vpack.c.bf16 %v913_v45, %v912_v48 }
  0xc9   : > { %v1263_v17 = vpack.c.bf16 %v917_v31, %v916_v51 }
  0xca   : > { %2702 = vmatmul.mubr.bf16.gmra.mxu1 %v1094_v20 }
  0xcb   : > { %2722 = vmatmul.mubr.bf16.vlgmr.msra.gmra.mxu0 %v1257_v39 }
  0xcc   : > { %2725 = vmatprep.mubr.bf16.mxu0 %v1258_v63 }
  0xd3   : > { %2726 = vmatmul.mubr.bf16.gmra.mxu0 %v1259_v30 }
  0xd4   : > { %2729 = vmatprep.mubr.bf16.mxu0 %v1260_v61 }
  0xdb   : > { %2730 = vmatmul.mubr.bf16.gmra.mxu0 %v1261_v37 }
  0xdc   : > { %2733 = vmatprep.mubr.bf16.mxu0 %v1262_v38 }
  0xe3   : > { %2734 = vmatmul.mubr.bf16.gmra.mxu0 %v1263_v17 }
 0x16b   : > { %v2659_v41 = vpop.f32.mrf.mxu0 }
 0x16c   : > { %v1427_v14 = vmin.f32 %v2659_v41, 60.0 }
 0x16d   : > { %v1024_v18 = vpop.f32.mrf.mxu0 }
 0x16e   : > { %v1445_v12 = vmul.f32 1.442695, %v1427_v14  ;;  %v1425_v7 = vmin.f32 %v1024_v18, 60.0 }
 0x16f   : > { %v2660_v54 = vpop.f32.mrf.mxu0 }
 0x170   : > { %2922 = vpow2.f32 %v1445_v12  ;;  %v1441_v52 = vmul.f32 1.442695, %v1425_v7  ;;  %v1428_v8 = vmin.f32 %v2660_v54, 60.0 }
 0x171   : > { %v1027_v10 = vpop.f32.mrf.mxu0 }
 0x172   : > { %2924 = vpow2.f32 %v1441_v52  ;;  %v1447_v46 = vmul.f32 1.442695, %v1428_v8  ;;  %v1426_v25 = vmin.f32 %v1027_v10, 60.0  ;;  %v2691_v58 = vpop.f32.mrf.mxu1 }
 0x173   : > { %v2663_v53 = vpop.f32.mrf.mxu0 }
 0x174   : > { %2926 = vpow2.f32 %v1447_v46  ;;  %v1443_v42 = vmul.f32 1.442695, %v1426_v25  ;;  %v1431_v21 = vmin.f32 %v2663_v53, 60.0  ;;  %v1193_v23 = vpop.f32.mrf.mxu1 }
 0x175   : > { %v1040_v1 = vpop.f32.mrf.mxu0 }
 0x176   : > { %2928 = vpow2.f32 %v1443_v42  ;;  %v1453_v56 = vmul.f32 1.442695, %v1431_v21  ;;  %v1429_v32 = vmin.f32 %v1040_v1, 60.0  ;;  %v2692_v33 = vpop.f32.mrf.mxu1 }
 0x177   : > { %v2664_v11 = vpop.f32.mrf.mxu0 }
 0x178   : > { %2930 = vpow2.f32 %v1453_v56  ;;  %v1449_v19 = vmul.f32 1.442695, %v1429_v32  ;;  %v1432_v62 = vmin.f32 %v2664_v11, 60.0  ;;  %v1196_v22 = vpop.f32.mrf.mxu1 }
 0x179   : > { %v1043_v44 = vpop.f32.mrf.mxu0 }
 0x17a   : > { %2932 = vpow2.f32 %v1449_v19  ;;  %v1455_v13 = vmul.f32 1.442695, %v1432_v62  ;;  %v1430_v43 = vmin.f32 %v1043_v44, 60.0  ;;  %v2695_v49 = vpop.f32.mrf.mxu1 }
 0x17b   : > { %v2667_v39 = vpop.f32.mrf.mxu0 }
 0x17c   : > { %2934 = vpow2.f32 %v1455_v13  ;;  %v1451_v50 = vmul.f32 1.442695, %v1430_v43  ;;  %v1435_v20 = vmin.f32 %v2667_v39, 60.0  ;;  %v1209_v24 = vpop.f32.mrf.mxu1 }
 0x17d   : > { %v2923_v63 = vpop.eup %2922  ;;  %v1056_v60 = vpop.f32.mrf.mxu0 }
 0x17e   : > { %1491 = vst [vmem:[#allocation2 + $0x58] sm:$0xff] %v2923_v63  ;;  %2936 = vpow2.f32 %v1451_v50  ;;  %v1461_v26 = vmul.f32 1.442695, %v1435_v20  ;;  %v1433_v9 = vmin.f32 %v1056_v60, 60.0  ;;  %v1475_v47 = vmul.f32 %v2923_v63, %v2691_v58  ;;  %v2696_v40 = vpop.f32.mrf.mxu1 }
 0x17f   : > { %v2925_v2 = vpop.eup %2924  ;;  %v2668_v30 = vpop.f32.mrf.mxu0 }
 0x180   : > { %1489 = vst [vmem:[#allocation2 + $0x30] sm:$0xff] %v2925_v2  ;;  %2938 = vpow2.f32 %v1461_v26  ;;  %v1457_v34 = vmul.f32 1.442695, %v1433_v9  ;;  %1507 = vst [vmem:[#allocation3 + $0x10] sm:$0xff] %v1475_v47  ;;  %v1436_v61 = vmin.f32 %v2668_v30, 60.0  ;;  %v1473_v35 = vmul.f32 %v2925_v2, %v1193_v23  ;;  %v1212_v45 = vpop.f32.mrf.mxu1 }
 0x181   : > { %v2927_v29 = vpop.eup %2926  ;;  %v1059_v48 = vpop.f32.mrf.mxu0 }
 0x182   : > { %1492 = vst [vmem:[#allocation2 + $0x18] sm:$0xff] %v2927_v29  ;;  %2940 = vpow2.f32 %v1457_v34  ;;  %v1463_v59 = vmul.f32 1.442695, %v1436_v61  ;;  %1505 = vst [vmem:[#allocation3 + $0x28] sm:$0xff] %v1473_v35  ;;  %v1434_v55 = vmin.f32 %v1059_v48, 60.0  ;;  %v1476_v37 = vmul.f32 %v2927_v29, %v2692_v33  ;;  %v2699_v38 = vpop.f32.mrf.mxu1 }
 0x183   : > { %v2929_v57 = vpop.eup %2928  ;;  %v2671_v0 = vpop.f32.mrf.mxu0 }
 0x184   : > { %1490 = vst [vmem:[#allocation2] sm:$0xff] %v2929_v57  ;;  %2942 = vpow2.f32 %v1463_v59  ;;  %v1459_v51 = vmul.f32 1.442695, %v1434_v55  ;;  %1508 = vst [vmem:[#allocation3 + $0x40] sm:$0xff] %v1476_v37  ;;  %v1439_v31 = vmin.f32 %v2671_v0, 60.0  ;;  %v1474_v17 = vmul.f32 %v2929_v57, %v1196_v22  ;;  %v1225_v18 = vpop.f32.mrf.mxu1 }
 0x185   : > { %v2931_v41 = vpop.eup %2930  ;;  %v1072_v14 = vpop.f32.mrf.mxu0 }
 0x186   : > { %1495 = vst [vmem:[#allocation2 + $0x8] sm:$0xff] %v2931_v41  ;;  %2944 = vpow2.f32 %v1459_v51  ;;  %v1469_v12 = vmul.f32 1.442695, %v1439_v31  ;;  %1506 = vst [vmem:[#allocation3 + $0x68] sm:$0xff] %v1474_v17  ;;  %v1437_v7 = vmin.f32 %v1072_v14, 60.0  ;;  %v1479_v54 = vmul.f32 %v2931_v41, %v2695_v49  ;;  %v2700_v10 = vpop.f32.mrf.mxu1 }
 0x187   : > { %v2933_v52 = vpop.eup %2932  ;;  %v2672_v8 = vpop.f32.mrf.mxu0 }
 0x188   : > { %1493 = vst [vmem:[#allocation2 + $0x50] sm:$0xff] %v2933_v52  ;;  %2946 = vpow2.f32 %v1469_v12  ;;  %v1465_v46 = vmul.f32 1.442695, %v1437_v7  ;;  %1511 = vst [vmem:[#allocation3 + $0x70] sm:$0xff] %v1479_v54  ;;  %v1440_v25 = vmin.f32 %v2672_v8, 60.0  ;;  %v1477_v53 = vmul.f32 %v2933_v52, %v1209_v24  ;;  %v1228_v21 = vpop.f32.mrf.mxu1 }
 0x189   : > { %v2935_v58 = vpop.eup %2934  ;;  %v1075_v42 = vpop.f32.mrf.mxu0 }
 0x18a   : > { %1496 = vst [vmem:[#allocation2 + $0x48] sm:$0xff] %v2935_v58  ;;  %2948 = vpow2.f32 %v1465_v46  ;;  %v1471_v1 = vmul.f32 1.442695, %v1440_v25  ;;  %1509 = vst [vmem:[#allocation3 + $0x48] sm:$0xff] %v1477_v53  ;;  %v1438_v23 = vmin.f32 %v1075_v42, 60.0  ;;  %v1480_v56 = vmul.f32 %v2935_v58, %v2696_v40  ;;  %v2703_v22 = vpop.f32.mrf.mxu1 }
 0x18b   : > { %v2937_v32 = vpop.eup %2936  ;;  %v4008_v11 = vpop.f32.mrf.mxu0 }
 0x18c   : > { %4562 = vst [vmem:[#allocation40_spill] sm:$0xff] %v4008_v11  ;;  %1494 = vst [vmem:[#allocation2 + $0x68] sm:$0xff] %v2937_v32  ;;  %2950 = vpow2.f32 %v1471_v1  ;;  %v1467_v33 = vmul.f32 1.442695, %v1438_v23  ;;  %v1478_v19 = vmul.f32 %v2937_v32, %v1212_v45  ;;  %v1241_v63 = vpop.f32.mrf.mxu1 }
 0x18d   : > { %1512 = vst [vmem:[#allocation3 + $0x38] sm:$0xff] %v1480_v56  ;;  %v2939_v62 = vpop.eup %2938  ;;  %v4010_v44 = vpop.f32.mrf.mxu0 }
 0x18e   : > { %4563 = vst [vmem:[#allocation41_spill] sm:$0xff] %v4010_v44  ;;  %1499 = vst [vmem:[#allocation2 + $0x10] sm:$0xff] %v2939_v62  ;;  %2952 = vpow2.f32 %v1467_v33  ;;  %v1483_v13 = vmul.f32 %v2939_v62, %v2699_v38  ;;  %v2704_v30 = vpop.f32.mrf.mxu1 }
 0x18f   : > { %1510 = vst [vmem:[#allocation3 + $0x30] sm:$0xff] %v1478_v19  ;;  %v2941_v43 = vpop.eup %2940  ;;  %v4012_v39 = vpop.f32.mrf.mxu0 }
 0x190   : > { %4564 = vst [vmem:[#allocation42_spill] sm:$0xff] %v4012_v39  ;;  %1497 = vst [vmem:[#allocation2 + $0x40] sm:$0xff] %v2941_v43  ;;  %v1481_v49 = vmul.f32 %v2941_v43, %v1225_v18  ;;  %v1244_v45 = vpop.f32.mrf.mxu1 }
 0x191   : > { %1515 = vst [vmem:[#allocation3 + $0x18] sm:$0xff] %v1483_v13  ;;  %v2943_v50 = vpop.eup %2942  ;;  %v4014_v20 = vpop.f32.mrf.mxu0 }
 0x192   : > { %4565 = vst [vmem:[#allocation43_spill] sm:$0xff] %v4014_v20  ;;  %1500 = vst [vmem:[#allocation2 + $0x38] sm:$0xff] %v2943_v50  ;;  %v1484_v60 = vmul.f32 %v2943_v50, %v2700_v10 }
 0x193   : > { %1513 = vst [vmem:[#allocation3 + $0x20] sm:$0xff] %v1481_v49  ;;  %v2945_v24 = vpop.eup %2944  ;;  %v4016_v26 = vpop.f32.mrf.mxu0 }
 0x194   : > { %4566 = vst [vmem:[#allocation44_spill] sm:$0xff] %v4016_v26  ;;  %1498 = vst [vmem:[#allocation2 + $0x20] sm:$0xff] %v2945_v24  ;;  %v1482_v9 = vmul.f32 %v2945_v24, %v1228_v21 }
 0x195   : > { %1516 = vst [vmem:[#allocation3 + $0x58] sm:$0xff] %v1484_v60  ;;  %v2947_v47 = vpop.eup %2946  ;;  %v4018_v2 = vpop.f32.mrf.mxu0 }
 0x196   : > { %4567 = vst [vmem:[#allocation45_spill] sm:$0xff] %v4018_v2  ;;  %1503 = vst [vmem:[#allocation2 + $0x78] sm:$0xff] %v2947_v47  ;;  %v1487_v40 = vmul.f32 %v2947_v47, %v2703_v22 }
 0x197   : > { %1514 = vst [vmem:[#allocation3 + $0x78] sm:$0xff] %v1482_v9  ;;  %v2949_v34 = vpop.eup %2948  ;;  %v4020_v61 = vpop.f32.mrf.mxu0 }
 0x198   : > { %4568 = vst [vmem:[#allocation46_spill] sm:$0xff] %v4020_v61  ;;  %1501 = vst [vmem:[#allocation2 + $0x60] sm:$0xff] %v2949_v34  ;;  %v1485_v35 = vmul.f32 %v2949_v34, %v1241_v63 }
 0x199   : > { %1519 = vst [vmem:[#allocation3 + $0x60] sm:$0xff] %v1487_v40  ;;  %v2951_v29 = vpop.eup %2950  ;;  %v4022_v48 = vpop.f32.mrf.mxu0 }
 0x19a   : > { %4569 = vst [vmem:[#allocation47_spill] sm:$0xff] %v4022_v48  ;;  %1504 = vst [vmem:[#allocation2 + $0x28] sm:$0xff] %v2951_v29  ;;  %v1488_v59 = vmul.f32 %v2951_v29, %v2704_v30 }
 0x19b   : > { %1517 = vst [vmem:[#allocation3] sm:$0xff] %v1485_v35  ;;  %v2953_v55 = vpop.eup %2952  ;;  %v4024_v37 = vpop.f32.mrf.mxu0 }
 0x19c   : > { %4570 = vst [vmem:[#allocation48_spill] sm:$0xff] %v4024_v37  ;;  %1502 = vst [vmem:[#allocation2 + $0x70] sm:$0xff] %v2953_v55  ;;  %v1486_v57 = vmul.f32 %v2953_v55, %v1244_v45 }
 0x19d   : > { %1520 = vst [vmem:[#allocation3 + $0x50] sm:$0xff] %v1488_v59  ;;  %v4026_v0 = vpop.f32.mrf.mxu0 }
 0x19e   : > { %4571 = vst [vmem:[#allocation49_spill] sm:$0xff] %v4026_v0  ;;  %1518 = vst [vmem:[#allocation3 + $0x8] sm:$0xff] %v1486_v57 }
 0x19f   : > { %v4028_v38 = vpop.f32.mrf.mxu0 }
 0x1a0   : > { %4572 = vst [vmem:[#allocation50_spill] sm:$0xff] %v4028_v38 }
 0x1a1   : > { %v4030_v51 = vpop.f32.mrf.mxu0 }
 0x1a2   : > { %4573 = vst [vmem:[#allocation51_spill] sm:$0xff] %v4030_v51 }
 0x1a3   : > { %v4032_v31 = vpop.f32.mrf.mxu0 }
 0x1a4   : > { %4574 = vst [vmem:[#allocation52_spill] sm:$0xff] %v4032_v31 }
 0x1a5   : > { %v4034_v17 = vpop.f32.mrf.mxu0 }
 0x1a6   : > { %4575 = vst [vmem:[#allocation53_spill] sm:$0xff] %v4034_v17 }
 0x1a7   : > { %v4036_v41 = vpop.f32.mrf.mxu0 }
 0x1a8   : > { %4576 = vst [vmem:[#allocation54_spill] sm:$0xff] %v4036_v41 }
 0x1a9   : > { %v4038_v14 = vpop.f32.mrf.mxu0 }
 0x1aa   : > { %4577 = vst [vmem:[#allocation55_spill] sm:$0xff] %v4038_v14 }
 0x1ab LB: >> { %v4057_v18 = vld [vmem:[#allocation3 + $0x28] sm:$0xff]  ;;  %vm1988_vm9 = vcmask 1046528   ;;  %v4061_v7 = vstv %s3316_s13  ;;  %v1989_v52 = vrot.slane %v3312_v15, 1  ;;  %v1990_v8 = vrot.slane %v3308_v16, 1  ;;  %v4579_v3 = vld [vmem:[#allocation23_spill] sm:$0xff]  ;;  %v4581_v4 = vld [vmem:[#allocation24_spill] sm:$0xff]  ;;  %s3316_s13 = sphi %s4050_s13, %s1560_s13   ;;  %v3312_v15 = vphi %v3612_v15, %v4626_v15   ;;  %v3308_v16 = vphi %v3614_v16, %v4625_v16  }
 0x1ac   : >> { %v4578_v36 = vld [vmem:[#allocation34_spill] sm:$0xff]  ;;  %v4580_v46 = vand.u32 15, %v4579_v3  ;;  %v4582_v25 = vand.u32 15, %v4581_v4  ;;  %v4583_v27 = vld [vmem:[#allocation32_spill] sm:$0xff]  ;;  %v4077_v58 = vld [vmem:[#allocation3 + $0x10] sm:$0xff]  ;;  %s1560_s13 = sadd.s32 1, %s3316_s13  }
 0x1ad   : >> { %v4064_v54 = vrot.slane %v3312_v15, %v4578_v36  ;;  %v4066_v10 = vld [vmem:[#allocation3 + $0x68] sm:$0xff]  ;;  %v4584_v53 = vand.u32 15, %v4583_v27  ;;  %v4585_v5 = vld [vmem:[#allocation25_spill] sm:$0xff]  ;;  %v1632_v21 = vld [vmem:[#allocation5 + $0x18] sm:$0xff]  ;;  %v4091_v1 = vsel %vm1988_vm9, %v1990_v8, %v1989_v52   ;;  %p1557_p10 = scmp.ge.s32.totalorder %s1560_s13, 16  }
 0x1ae   : >> { %vm1564_vm10 = vcmp.ge.s32.totalorder %v4580_v46, %v4061_v7  ;;  %vm1565_vm11 = vcmp.ge.s32.totalorder %v4582_v25, %v4061_v7  ;;  %v4586_v15 = vand.u32 15, %v4585_v5  ;;  %v4082_v16 = vld [vmem:[#allocation3 + $0x40] sm:$0xff]  ;;  %4588 = vst [vmem:[#allocation57_spill] sm:$0xff] %v4091_v1  ;;  %v1633_v56 = vld [vmem:[#allocation5 + $0x38] sm:$0xff]  ;;  %v1634_v32 = vld [vmem:[#allocation5 + $0x48] sm:$0xff]  ;;  %s2576_s23 = sshll.u32 (%p1557_p10), %s3404_s15, 11 }
 0x1af   : >> { %vm1566_vm12 = vcmp.ge.s32.totalorder %v4584_v53, %v4061_v7  ;;  %v4085_v42 = vsel %vm1564_vm10, %v4064_v54, 0.0  ;;  %v4094_v23 = vsel %vm1565_vm11, %v4064_v54, 0.0  ;;  %v1635_v13 = vld [vmem:[#allocation5 + $0x40] sm:$0xff]  ;;  %v4106_v43 = vld [vmem:[#allocation3 + $0x48] sm:$0xff]  ;;  %v4108_v49 = vld [vmem:[#allocation3 + $0x30] sm:$0xff]  ;;  %s2371_s1 = sshll.u32 (%p1557_p10), %s4042_s28, 4  ;;  %s4417_s20 = scalar_lea.hbm (%p1557_p10), %s4473_s9, %s2576_s23  ;;  %s4419_s1 = int_to_ptr.vmem [resolvable:$true] %s2371_s1 }
 0x1b0   : >> { %vm1567_vm13 = vcmp.ge.s32.totalorder %v4586_v15, %v4061_v7  ;;  %v4088_v15 = vsel %vm1988_vm9, %v1989_v52, %v1990_v8   ;;  %v1664_v33 = vmul.f32 %v4057_v18, %v4085_v42  ;;  %v1665_v19 = vmul.f32 %v4066_v10, %v4094_v23  ;;  %v4589_v28 = vld [vmem:[#allocation33_spill] sm:$0xff]  ;;  %v4591_v6 = vld [vmem:[#allocation26_spill] sm:$0xff]  ;;  %v4130_v57 = vld [vmem:[#allocation3 + $0x70] sm:$0xff]  ;;  %s2358_s17 = scalar_lea.sflag (%p1557_p10), [#allocation8], %s3559_s5  ;;  %s3216_s16 = scalar_lea.vmem (%p1557_p10), %s4419_s1, 2048 }
 0x1b1   : >> { %4587 = vst [vmem:[#allocation56_spill] sm:$0xff] %v4088_v15  ;;  %v4101_v62 = vsel %vm1566_vm12, %v4064_v54, 0.0  ;;  %v4104_v22 = vsel %vm1567_vm13, %v4064_v54, 0.0  ;;  %v4590_v60 = vand.u32 15, %v4589_v28  ;;  %v4592_v24 = vand.u32 15, %v4591_v6  ;;  %v1636_v40 = vld [vmem:[#allocation5 + $0x28] sm:$0xff]  ;;  %p3217_p11 = scmp.ne.s32.totalorder (%p1557_p10), %s4419_s1, %s3216_s16 }
 0x1b2   : >> { %v1666_v50 = vmul.f32 %v4077_v58, %v4101_v62  ;;  %v1667_v63 = vmul.f32 %v4082_v16, %v4104_v22  ;;  %v1680_v9 = vadd.f32 %v1664_v33, %v1632_v21  ;;  %v1681_v47 = vadd.f32 %v1665_v19, %v1633_v56  ;;  %v1637_v35 = vld [vmem:[#allocation5] sm:$0xff]  ;;  %v4132_v52 = vld [vmem:[#allocation3 + $0x38] sm:$0xff]  ;;  %v4593_v8 = vld [vmem:[#allocation35_spill] sm:$0xff]  ;;  %p4643_p0 = scmp.ne.s32.totalorder (%p1557_p10), %s4519_s29, 0  ;;  %s3330_s15 = smov (%p1557_p10), [#allocation17]  }
 0x1b3   : >> { %vm1568_vm14 = vcmp.ge.s32.totalorder %v4590_v60, %v4061_v7  ;;  %vm1569_vm15 = vcmp.ge.s32.totalorder %v4592_v24, %v4061_v7  ;;  %v4594_v46 = vand.u32 15, %v4593_v8  ;;  %v4595_v25 = vld [vmem:[#allocation27_spill] sm:$0xff]  ;;  %v4597_v21 = vld [vmem:[#allocation36_spill] sm:$0xff]  ;;  %v1638_v24 = vld [vmem:[#allocation5 + $0x8] sm:$0xff]  ;;  %s3220_s24 = sshll.u32 (%p1557_p10), %s3330_s15, 4  ;;  %s3221_s24 = int_to_ptr.vmem [resolvable:$false] %s3220_s24 }
 0x1b4   : >> { %v4121_v30 = vsel %vm1568_vm14, %v4064_v54, 0.0  ;;  %v4124_v34 = vsel %vm1569_vm15, %v4064_v54, 0.0  ;;  %v1682_v29 = vadd.f32 %v1666_v50, %v1634_v32  ;;  %v1683_v45 = vadd.f32 %v1667_v63, %v1635_v13  ;;  %1696 = vst [vmem:[#allocation5 + $0x18] sm:$0xff] %v1680_v9  ;;  %1697 = vst [vmem:[#allocation5 + $0x38] sm:$0xff] %v1681_v47  ;;  %v4143_v32 = vld [vmem:[#allocation3 + $0x20] sm:$0xff]  ;;  %v4599_v33 = vld [vmem:[#allocation28_spill] sm:$0xff]  ;;  %p3218_p13 = pnand (%p1557_p10), %p3217_p11, %p4643_p0  ;;  %p3223_p9 = scmp.lt.s32.totalorder (%p1557_p10), %s4419_s1, %s3221_s24 }
 0x1b5   : >> { %v1668_v59 = vmul.f32 %v4106_v43, %v4121_v30  ;;  %v1669_v55 = vmul.f32 %v4108_v49, %v4124_v34  ;;  %vm1570_vm1 = vcmp.ge.s32.totalorder %v4594_v46, %v4061_v7  ;;  %v4596_v53 = vand.u32 15, %v4595_v25  ;;  %v4148_v13 = vld [vmem:[#allocation3 + $0x78] sm:$0xff]  ;;  %v1639_v47 = vld [vmem:[#allocation5 + $0x70] sm:$0xff]  ;;  %v1640_v8 = vld [vmem:[#allocation5 + $0x68] sm:$0xff]  ;;  %s3222_s25 = scalar_lea.vmem (%p1557_p10), %s3221_s24, 4096 }
 0x1b6   : >> { %v4598_v56 = vand.u32 15, %v4597_v21  ;;  %v4600_v19 = vand.u32 15, %v4599_v33  ;;  %1698 = vst [vmem:[#allocation5 + $0x48] sm:$0xff] %v1682_v29  ;;  %1699 = vst [vmem:[#allocation5 + $0x40] sm:$0xff] %v1683_v45  ;;  %v4151_v60 = vsel %vm1570_vm1, %v4064_v54, 0.0  ;;  %v4166_v45 = vld [vmem:[#allocation3 + $0x18] sm:$0xff]  ;;  %p3219_p5 = pneg (%p1557_p10), %p3218_p13  ;;  %p3224_p1 = scmp.lt.s32.totalorder (%p1557_p10), %s3222_s25, %s3216_s16 }
 0x1b7   : >> { %vm1571_vm2 = vcmp.ge.s32.totalorder %v4596_v53, %v4061_v7  ;;  %v1684_v50 = vadd.f32 %v1668_v59, %v1636_v40  ;;  %v1685_v63 = vadd.f32 %v1669_v55, %v1637_v35  ;;  %v1670_v46 = vmul.f32 %v4130_v57, %v4151_v60  ;;  %v1641_v35 = vld [vmem:[#allocation5 + $0x60] sm:$0xff]  ;;  %v4168_v59 = vld [vmem:[#allocation3 + $0x58] sm:$0xff]  ;;  %v1643_v5 = vld [vmem:[#allocation5 + $0x30] sm:$0xff] }
 0x1b8   : >> { %vm1572_vm3 = vcmp.ge.s32.totalorder %v4598_v56, %v4061_v7  ;;  %vm1573_vm4 = vcmp.ge.s32.totalorder %v4600_v19, %v4061_v7  ;;  %v4154_v9 = vsel %vm1571_vm2, %v4064_v54, 0.0  ;;  %v4601_v21 = vld [vmem:[#allocation37_spill] sm:$0xff]  ;;  %v1646_v31 = vld [vmem:[#allocation5 + $0x58] sm:$0xff]  ;;  %v4613_v14 = vld [vmem:[#allocation31_spill] sm:$0xff]  ;;  %p3225_p3 = por (%p1557_p10), %p3224_p1, %p3223_p9 }
 0x1b9   : >> { %v1671_v25 = vmul.f32 %v4132_v52, %v4154_v9  ;;  %v4161_v29 = vsel %vm1572_vm3, %v4064_v54, 0.0  ;;  %v4164_v40 = vsel %vm1573_vm4, %v4064_v54, 0.0  ;;  %1700 = vst [vmem:[#allocation5 + $0x28] sm:$0xff] %v1684_v50  ;;  %1701 = vst [vmem:[#allocation5] sm:$0xff] %v1685_v63  ;;  %v4602_v56 = vand.u32 15, %v4601_v21  ;;  %v4603_v33 = vld [vmem:[#allocation29_spill] sm:$0xff] }
 0x1ba   : >> { %v1672_v55 = vmul.f32 %v4143_v32, %v4161_v29  ;;  %v1673_v53 = vmul.f32 %v4148_v13, %v4164_v40  ;;  %v4604_v19 = vand.u32 15, %v4603_v33  ;;  %v1686_v12 = vadd.f32 %v1670_v46, %v1638_v24  ;;  %v1642_v50 = vld [vmem:[#allocation5 + $0x78] sm:$0xff]  ;;  %v4186_v6 = vld [vmem:[#allocation3] sm:$0xff]  ;;  %v1644_v24 = vld [vmem:[#allocation5 + $0x50] sm:$0xff]  ;;  %p3226_p4 = pnand (%p1557_p10), %p3225_p3, %p3219_p5 }
 0x1bb   : >> { %vm1574_vm5 = vcmp.ge.s32.totalorder %v4602_v56, %v4061_v7  ;;  %v1687_v3 = vadd.f32 %v1671_v25, %v1639_v47  ;;  %v1645_v47 = vld [vmem:[#allocation5 + $0x20] sm:$0xff]  ;;  %v4192_v46 = vld [vmem:[#allocation3 + $0x8] sm:$0xff]  ;;  %v4196_v33 = vld [vmem:[#allocation3 + $0x50] sm:$0xff] }
 0x1bc   : >> { %vm1575_vm6 = vcmp.ge.s32.totalorder %v4604_v19, %v4061_v7  ;;  %v4181_v4 = vsel %vm1574_vm5, %v4064_v54, 0.0  ;;  %v1688_v27 = vadd.f32 %v1672_v55, %v1640_v8  ;;  %v1689_v28 = vadd.f32 %v1673_v53, %v1641_v35  ;;  %v4194_v25 = vld [vmem:[#allocation3 + $0x60] sm:$0xff]  ;;  %1702 = vst [vmem:[#allocation5 + $0x8] sm:$0xff] %v1686_v12  ;;  %v4605_v19 = vld [vmem:[#allocation38_spill] sm:$0xff]  ;;  %v4609_v53 = vld [vmem:[#allocation39_spill] sm:$0xff] }
 0x1bd   : >> { %v4184_v63 = vsel %vm1575_vm6, %v4064_v54, 0.0  ;;  %v1674_v21 = vmul.f32 %v4166_v45, %v4181_v4  ;;  %1703 = vst [vmem:[#allocation5 + $0x70] sm:$0xff] %v1687_v3  ;;  %v4606_v8 = vand.u32 15, %v4605_v19  ;;  %v4607_v35 = vld [vmem:[#allocation30_spill] sm:$0xff]  ;;  %v4610_v36 = vand.u32 15, %v4609_v53  ;;  %v1647_v19 = vld [vmem:[#allocation5 + $0x10] sm:$0xff] }
 0x1be   : >> { %v1675_v56 = vmul.f32 %v4168_v59, %v4184_v63  ;;  %v4608_v55 = vand.u32 15, %v4607_v35  ;;  %v4614_v12 = vand.u32 15, %v4613_v14  ;;  %v4218_v17 = vld [vmem:[#allocation2 + $0x30] sm:$0xff]  ;;  %v4220_v35 = vld [vmem:[#allocation2] sm:$0xff]  ;;  %1704 = vst [vmem:[#allocation5 + $0x68] sm:$0xff] %v1688_v27  ;;  %1705 = vst [vmem:[#allocation5 + $0x60] sm:$0xff] %v1689_v28 }
 0x1bf   : >> { %vm1576_vm7 = vcmp.ge.s32.totalorder %v4606_v8, %v4061_v7  ;;  %vm4207_vm9 = vcmp.ge.s32.totalorder %v4610_v36, %v4061_v7  ;;  %v1712_v8 = vld [vmem:[#allocation4 + $0x8] sm:$0xff]  ;;  %4617 = vst [vmem:[#allocation58_spill] sm:$0xff] %v4218_v17  ;;  %4618 = vst [vmem:[#allocation59_spill] sm:$0xff] %v4220_v35  ;;  %v1690_v36 = vadd.f32 %v1674_v21, %v1642_v50  ;;  %v1713_v14 = vld [vmem:[#allocation4] sm:$0xff] }
 0x1c0   : >> { %vm1577_vm8 = vcmp.ge.s32.totalorder %v4608_v55, %v4061_v7  ;;  %vm4214_vm10 = vcmp.ge.s32.totalorder %v4614_v12, %v4061_v7  ;;  %v1691_v55 = vadd.f32 %v1675_v56, %v1643_v5  ;;  %v4223_v53 = vsel %vm1576_vm7, %v4064_v54, 0.0  ;;  %v4228_v7 = vld [vmem:[#allocation2 + $0x58] sm:$0xff]  ;;  %v1714_v50 = vld [vmem:[#allocation4 + $0x48] sm:$0xff]  ;;  %v1715_v21 = vld [vmem:[#allocation4 + $0x60] sm:$0xff] }
 0x1c1   : >> { %v4226_v38 = vsel %vm1577_vm8, %v4064_v54, 0.0  ;;  %v4230_v12 = vld [vmem:[#allocation2 + $0x18] sm:$0xff]  ;;  %v1676_v37 = vmul.f32 %v4186_v6, %v4223_v53  ;;  %v4239_v5 = vsel %vm4207_vm9, %v4064_v54, 0.0  ;;  %v4244_v28 = vsel %vm4214_vm10, %v4064_v54, 0.0  ;;  %v4246_v56 = vld [vmem:[#allocation2 + $0x50] sm:$0xff]  ;;  %1706 = vst [vmem:[#allocation5 + $0x78] sm:$0xff] %v1690_v36 }
 0x1c2   : >> { %4619 = vst [vmem:[#allocation60_spill] sm:$0xff] %v4230_v12  ;;  %v1677_v27 = vmul.f32 %v4192_v46, %v4226_v38  ;;  %1707 = vst [vmem:[#allocation5 + $0x30] sm:$0xff] %v1691_v55  ;;  %v1678_v51 = vmul.f32 %v4194_v25, %v4239_v5  ;;  %v1679_v0 = vmul.f32 %v4196_v33, %v4244_v28  ;;  %v1716_v54 = vld [vmem:[#allocation4 + $0x68] sm:$0xff]  ;;  %v1717_v61 = vld [vmem:[#allocation4 + $0x18] sm:$0xff] }
 0x1c3   : >> { %v1744_v41 = vmul.f32 %v4218_v17, %v4085_v42  ;;  %v1745_v3 = vmul.f32 %v4220_v35, %v4094_v23  ;;  %v4256_v26 = vld [vmem:[#allocation2 + $0x68] sm:$0xff]  ;;  %v1692_v36 = vadd.f32 %v1676_v37, %v1644_v24  ;;  %v1746_v2 = vmul.f32 %v4228_v7, %v4101_v62  ;;  %v1718_v11 = vld [vmem:[#allocation4 + $0x10] sm:$0xff]  ;;  %v4266_v42 = vld [vmem:[#allocation2 + $0x40] sm:$0xff] }
 0x1c4   : >> { %v4258_v48 = vld [vmem:[#allocation2 + $0x8] sm:$0xff]  ;;  %v1693_v55 = vadd.f32 %v1677_v27, %v1645_v47  ;;  %v1747_v39 = vmul.f32 %v4230_v12, %v4104_v22  ;;  %v4268_v23 = vld [vmem:[#allocation2 + $0x20] sm:$0xff]  ;;  %v1694_v44 = vadd.f32 %v1678_v51, %v1646_v31  ;;  %v1695_v15 = vadd.f32 %v1679_v0, %v1647_v19  ;;  %v1719_v17 = vld [vmem:[#allocation4 + $0x38] sm:$0xff] }
 0x1c5   : >> { %v4264_v20 = vld [vmem:[#allocation2 + $0x48] sm:$0xff]  ;;  %v1760_v1 = vadd.f32 %v1744_v41, %v1712_v8  ;;  %v1761_v35 = vadd.f32 %v1745_v3, %v1713_v14  ;;  %v4270_v37 = vld [vmem:[#allocation2 + $0x10] sm:$0xff]  ;;  %v4272_v24 = vld [vmem:[#allocation2 + $0x38] sm:$0xff]  ;;  %1708 = vst [vmem:[#allocation5 + $0x50] sm:$0xff] %v1692_v36  ;;  %v1762_v62 = vadd.f32 %v1746_v2, %v1714_v50  ;;  %v1748_v47 = vmul.f32 %v4246_v56, %v4121_v30 }
 0x1c6   : >> { %1709 = vst [vmem:[#allocation5 + $0x20] sm:$0xff] %v1693_v55  ;;  %v1763_v22 = vadd.f32 %v1747_v39, %v1715_v21  ;;  %v1749_v27 = vmul.f32 %v4256_v26, %v4124_v34  ;;  %v1720_v12 = vld [vmem:[#allocation4 + $0x40] sm:$0xff]  ;;  %v1721_v51 = vld [vmem:[#allocation4 + $0x28] sm:$0xff]  ;;  %v1722_v0 = vld [vmem:[#allocation4 + $0x70] sm:$0xff]  ;;  %v1750_v31 = vmul.f32 %v4258_v48, %v4151_v60  ;;  %v1751_v2 = vmul.f32 %v4264_v20, %v4154_v9 }
 0x1c7   : >> { %1710 = vst [vmem:[#allocation5 + $0x58] sm:$0xff] %v1694_v44  ;;  %1711 = vst [vmem:[#allocation5 + $0x10] sm:$0xff] %v1695_v15  ;;  %v1752_v39 = vmul.f32 %v4266_v42, %v4161_v29  ;;  %v1753_v30 = vmul.f32 %v4268_v23, %v4164_v40  ;;  %v1723_v34 = vld [vmem:[#allocation4 + $0x20] sm:$0xff]  ;;  %v4288_v8 = vld [vmem:[#allocation2 + $0x70] sm:$0xff]  ;;  %v1764_v44 = vadd.f32 %v1748_v47, %v1716_v54  ;;  %v1827_v55 = vrot.slane %v4066_v10, 7 }
 0x1c8   : >> { %1776 = vst [vmem:[#allocation4 + $0x8] sm:$0xff] %v1760_v1  ;;  %1777 = vst [vmem:[#allocation4] sm:$0xff] %v1761_v35  ;;  %v4286_v19 = vld [vmem:[#allocation2 + $0x60] sm:$0xff]  ;;  %v1765_v15 = vadd.f32 %v1749_v27, %v1717_v61  ;;  %v1754_v1 = vmul.f32 %v4270_v37, %v4181_v4  ;;  %v1755_v60 = vmul.f32 %v4272_v24, %v4184_v63  ;;  %v4294_v9 = vld [vmem:[#allocation2 + $0x78] sm:$0xff] }
 0x1c9   : >> { %1778 = vst [vmem:[#allocation4 + $0x48] sm:$0xff] %v1762_v62  ;;  %1779 = vst [vmem:[#allocation4 + $0x60] sm:$0xff] %v1763_v22  ;;  %v4296_v29 = vld [vmem:[#allocation2 + $0x28] sm:$0xff]  ;;  %v1766_v40 = vadd.f32 %v1750_v31, %v1718_v11  ;;  %v1767_v35 = vadd.f32 %v1751_v2, %v1719_v17  ;;  %v1768_v14 = vadd.f32 %v1752_v39, %v1720_v12  ;;  %v1724_v21 = vld [vmem:[#allocation4 + $0x58] sm:$0xff]  ;;  %v1809_v12 = vrot.slane %v4196_v33, 7 }
 0x1ca   : >> { %v1769_v50 = vadd.f32 %v1753_v30, %v1721_v51  ;;  %v1725_v41 = vld [vmem:[#allocation4 + $0x30] sm:$0xff]  ;;  %1780 = vst [vmem:[#allocation4 + $0x68] sm:$0xff] %v1764_v44  ;;  %1781 = vst [vmem:[#allocation4 + $0x18] sm:$0xff] %v1765_v15  ;;  %v1770_v3 = vadd.f32 %v1754_v1, %v1722_v0  ;;  %v1771_v61 = vadd.f32 %v1755_v60, %v1723_v34  ;;  %v1727_v36 = vld [vmem:[#allocation4 + $0x78] sm:$0xff]  ;;  %v1829_v62 = vrot.slane %v4077_v58, 7 }
 0x1cb   : >> { %v1756_v4 = vmul.f32 %v4286_v19, %v4223_v53  ;;  %v1757_v63 = vmul.f32 %v4288_v8, %v4226_v38  ;;  %v1726_v54 = vld [vmem:[#allocation4 + $0x50] sm:$0xff]  ;;  %1782 = vst [vmem:[#allocation4 + $0x10] sm:$0xff] %v1766_v40  ;;  %1783 = vst [vmem:[#allocation4 + $0x38] sm:$0xff] %v1767_v35  ;;  %v1758_v11 = vmul.f32 %v4294_v9, %v4239_v5  ;;  %v1831_v22 = vrot.slane %v4082_v16, 7  ;;  %v4622_v40 = vld [vmem:[#allocation58_spill] sm:$0xff] }
 0x1cc   : >> { %1784 = vst [vmem:[#allocation4 + $0x40] sm:$0xff] %v1768_v14  ;;  %1785 = vst [vmem:[#allocation4 + $0x28] sm:$0xff] %v1769_v50  ;;  %v1759_v17 = vmul.f32 %v4296_v29, %v4244_v28  ;;  %v4620_v51 = vrot.slane %v4057_v18, 7  ;;  %v1830_v10 = vsel %vm670_vm0, %v1827_v55, %v1829_v62  ;;  %v1833_v16 = vrot.slane %v4106_v43, 7  ;;  %v4623_v14 = vld [vmem:[#allocation59_spill] sm:$0xff] }
 0x1cd   : >> { %1786 = vst [vmem:[#allocation4 + $0x70] sm:$0xff] %v1770_v3  ;;  %1787 = vst [vmem:[#allocation4 + $0x20] sm:$0xff] %v1771_v61  ;;  %v1772_v53 = vadd.f32 %v1756_v4, %v1724_v21  ;;  %v1773_v38 = vadd.f32 %v1757_v63, %v1725_v41  ;;  %v1774_v47 = vadd.f32 %v1758_v11, %v1726_v54  ;;  %v1835_v0 = vrot.slane %v4108_v49, 7  ;;  %v4624_v61 = vld [vmem:[#allocation60_spill] sm:$0xff] }
 0x1ce   : >> { %v1775_v27 = vadd.f32 %v1759_v17, %v1727_v36  ;;  %v1872_v5 = vsel %vm670_vm0, %v1809_v12, %v4620_v51  ;;  %v4621_v28 = vmov %v4620_v51  ;;  %v1832_v58 = vsel %vm670_vm0, %v1829_v62, %v1831_v22  ;;  %1875 = vst [vmem:[#allocation3 + $0x10] sm:$0xff] %v1830_v10  ;;  %v4627_v10 = vld [vmem:[#allocation41_spill] sm:$0xff] (%p1557_p10) }
 0x1cf   : >> { %v1828_v33 = vsel %vm670_vm0, %v4621_v28, %v1827_v55  ;;  %1788 = vst [vmem:[#allocation4 + $0x58] sm:$0xff] %v1772_v53  ;;  %1789 = vst [vmem:[#allocation4 + $0x30] sm:$0xff] %v1773_v38  ;;  %v1837_v18 = vrot.slane %v4130_v57, 7  ;;  %v1839_v31 = vrot.slane %v4132_v52, 7  ;;  %v1841_v2 = vrot.slane %v4143_v32, 7 }
 0x1d0   : >> { %1873 = vst [vmem:[#allocation3 + $0x28] sm:$0xff] %v1872_v5  ;;  %1874 = vst [vmem:[#allocation3 + $0x68] sm:$0xff] %v1828_v33  ;;  %v1843_v39 = vrot.slane %v4148_v13, 7  ;;  %v1834_v30 = vsel %vm670_vm0, %v1831_v22, %v1833_v16  ;;  %v1836_v34 = vsel %vm670_vm0, %v1833_v16, %v1835_v0  ;;  %v1845_v43 = vrot.slane %v4166_v45, 7  ;;  %v4625_v16 = vld [vmem:[#allocation57_spill] sm:$0xff]  ;;  %v2957_v33 = vld [vmem:[#allocation15 + $0x20] sm:$0xff] (%p1557_p10)  }
 0x1d1   : >> { %1790 = vst [vmem:[#allocation4 + $0x50] sm:$0xff] %v1774_v47  ;;  %1791 = vst [vmem:[#allocation4 + $0x78] sm:$0xff] %v1775_v27  ;;  %v1847_v49 = vrot.slane %v4168_v59, 7  ;;  %v1838_v44 = vsel %vm670_vm0, %v1835_v0, %v1837_v18  ;;  %v1840_v57 = vsel %vm670_vm0, %v1837_v18, %v1839_v31  ;;  %v1842_v52 = vsel %vm670_vm0, %v1839_v31, %v1841_v2  ;;  %v4628_v0 = vld [vmem:[#allocation43_spill] sm:$0xff] (%p1557_p10)  ;;  %v2108_v31 = vld [vmem:[#allocation4 + $0x8] sm:$0xff] (%p1557_p10) }
 0x1d2   : >> { %1876 = vst [vmem:[#allocation3 + $0x40] sm:$0xff] %v1832_v58  ;;  %1877 = vst [vmem:[#allocation3 + $0x48] sm:$0xff] %v1834_v30  ;;  %v1844_v32 = vsel %vm670_vm0, %v1841_v2, %v1843_v39  ;;  %v1846_v13 = vsel %vm670_vm0, %v1843_v39, %v1845_v43  ;;  %v1849_v59 = vrot.slane %v4186_v6, 7  ;;  %v1851_v15 = vrot.slane %v4192_v46, 7  ;;  %v2109_v2 = vld [vmem:[#allocation4] sm:$0xff] (%p1557_p10)  ;;  %v4629_v39 = vld [vmem:[#allocation40_spill] sm:$0xff] (%p1557_p10) }
 0x1d3   : >> { %1878 = vst [vmem:[#allocation3 + $0x30] sm:$0xff] %v1836_v34  ;;  %1879 = vst [vmem:[#allocation3 + $0x70] sm:$0xff] %v1838_v44  ;;  %v1848_v45 = vsel %vm670_vm0, %v1845_v43, %v1847_v49  ;;  %v1853_v1 = vrot.slane %v4194_v25, 7  ;;  %v1906_v60 = vrot.slane %v4296_v29, 7  ;;  %v1923_v35 = vrot.slane %v4622_v40, 7  ;;  %v4630_v16 = vld [vmem:[#allocation42_spill] sm:$0xff] (%p1557_p10) }
 0x1d4   : >> { %1880 = vst [vmem:[#allocation3 + $0x38] sm:$0xff] %v1840_v57  ;;  %1881 = vst [vmem:[#allocation3 + $0x20] sm:$0xff] %v1842_v52  ;;  %v1924_v50 = vrot.slane %v4623_v14, 7  ;;  %v1850_v21 = vsel %vm670_vm0, %v1847_v49, %v1849_v59  ;;  %v1852_v41 = vsel %vm670_vm0, %v1849_v59, %v1851_v15  ;;  %v1926_v3 = vrot.slane %v4228_v7, 7  ;;  %v2958_v43 = vld [vmem:[#allocation15 + $0x18] sm:$0xff] (%p1557_p10)   ;;  %v2111_v44 = vld [vmem:[#allocation4 + $0x60] sm:$0xff] (%p1557_p10) }
 0x1d5   : >> { %1882 = vst [vmem:[#allocation3 + $0x78] sm:$0xff] %v1844_v32  ;;  %1883 = vst [vmem:[#allocation3 + $0x18] sm:$0xff] %v1846_v13  ;;  %v1928_v6 = vrot.slane %v4624_v61, 7  ;;  %v1854_v46 = vsel %vm670_vm0, %v1851_v15, %v1853_v1  ;;  %v1855_v25 = vsel %vm670_vm0, %v1853_v1, %v1809_v12  ;;  %v1969_v29 = vsel %vm670_vm0, %v1906_v60, %v1923_v35  ;;  %v4626_v15 = vld [vmem:[#allocation56_spill] sm:$0xff]  ;;  %v2110_v49 = vld [vmem:[#allocation4 + $0x48] sm:$0xff] (%p1557_p10) }
 0x1d6   : >> { %1884 = vst [vmem:[#allocation3 + $0x58] sm:$0xff] %v1848_v45  ;;  %1885 = vst [vmem:[#allocation3] sm:$0xff] %v1850_v21  ;;  %v1925_v4 = vsel %vm670_vm0, %v1923_v35, %v1924_v50  ;;  %v1927_v63 = vsel %vm670_vm0, %v1924_v50, %v1926_v3  ;;  %v1930_v54 = vrot.slane %v4246_v56, 7  ;;  %v1932_v36 = vrot.slane %v4256_v26, 7  ;;  %v4631_v57 = vld [vmem:[#allocation45_spill] sm:$0xff] (%p1557_p10)  ;;  %v4632_v32 = vld [vmem:[#allocation47_spill] sm:$0xff] (%p1557_p10) }
 0x1d7   : >> { %1886 = vst [vmem:[#allocation3 + $0x8] sm:$0xff] %v1852_v41  ;;  %1887 = vst [vmem:[#allocation3 + $0x60] sm:$0xff] %v1854_v46  ;;  %v1929_v7 = vsel %vm670_vm0, %v1926_v3, %v1928_v6  ;;  %v1934_v11 = vrot.slane %v4258_v48, 7  ;;  %v1936_v17 = vrot.slane %v4264_v20, 7  ;;  %v1938_v12 = vrot.slane %v4266_v42, 7  ;;  %v2959_v45 = vld [vmem:[#allocation15 + $0x10] sm:$0xff] (%p1557_p10)  }
 0x1d8   : >> { %1888 = vst [vmem:[#allocation3 + $0x50] sm:$0xff] %v1855_v25  ;;  %1970 = vst [vmem:[#allocation2 + $0x30] sm:$0xff] %v1969_v29  ;;  %v1940_v55 = vrot.slane %v4268_v23, 7  ;;  %v1931_v53 = vsel %vm670_vm0, %v1928_v6, %v1930_v54  ;;  %v1933_v38 = vsel %vm670_vm0, %v1930_v54, %v1932_v36  ;;  %v1942_v62 = vrot.slane %v4270_v37, 7  ;;  %v2112_v59 = vld [vmem:[#allocation4 + $0x68] sm:$0xff] (%p1557_p10)  ;;  %v2113_v15 = vld [vmem:[#allocation4 + $0x18] sm:$0xff] (%p1557_p10) }
 0x1d9   : >> { %1971 = vst [vmem:[#allocation2] sm:$0xff] %v1925_v4  ;;  %1972 = vst [vmem:[#allocation2 + $0x58] sm:$0xff] %v1927_v63  ;;  %v1944_v56 = vrot.slane %v4272_v24, 7  ;;  %v1935_v26 = vsel %vm670_vm0, %v1932_v36, %v1934_v11  ;;  %v1937_v48 = vsel %vm670_vm0, %v1934_v11, %v1936_v17  ;;  %v1939_v20 = vsel %vm670_vm0, %v1936_v17, %v1938_v12  ;;  %v4633_v1 = vld [vmem:[#allocation44_spill] sm:$0xff] (%p1557_p10)  ;;  %v4634_v40 = vld [vmem:[#allocation46_spill] sm:$0xff] (%p1557_p10) }
 0x1da   : >> { %1973 = vst [vmem:[#allocation2 + $0x18] sm:$0xff] %v1929_v7  ;;  %1974 = vst [vmem:[#allocation2 + $0x50] sm:$0xff] %v1931_v53  ;;  %v1941_v42 = vsel %vm670_vm0, %v1938_v12, %v1940_v55  ;;  %v1943_v23 = vsel %vm670_vm0, %v1940_v55, %v1942_v62  ;;  %v1946_v24 = vrot.slane %v4286_v19, 7  ;;  %v1948_v22 = vrot.slane %v4288_v8, 7  ;;  %v2954_v19 = vld [vmem:[#allocation15 + $0x38] sm:$0xff] (%p1557_p10)   ;;  %v2955_v8 = vld [vmem:[#allocation15 + $0x30] sm:$0xff] (%p1557_p10)  }
 0x1db   : >> { %1975 = vst [vmem:[#allocation2 + $0x68] sm:$0xff] %v1933_v38  ;;  %1976 = vst [vmem:[#allocation2 + $0x8] sm:$0xff] %v1935_v26  ;;  %v1945_v37 = vsel %vm670_vm0, %v1942_v62, %v1944_v56  ;;  %v1950_v47 = vrot.slane %v4294_v9, 7  ;;  %2737 = vmatprep.subr.bf16.mxu1 (%p1557_p10), %v2954_v19  ;;  %v2956_v9 = vld [vmem:[#allocation15 + $0x28] sm:$0xff] (%p1557_p10)   ;;  %v2546_v58 = vmul.f32 (%p1557_p10), -1.442695, %v4627_v10 }
 0x1dc   : >> { %1977 = vst [vmem:[#allocation2 + $0x48] sm:$0xff] %v1937_v48  ;;  %1978 = vst [vmem:[#allocation2 + $0x40] sm:$0xff] %v1939_v20  ;;  %v1947_v27 = vsel %vm670_vm0, %v1944_v56, %v1946_v24  ;;  %v1949_v51 = vsel %vm670_vm0, %v1946_v24, %v1948_v22  ;;  %1559 = sbr.rel (!%p1557_p10) target bundleno = 427 (0x1ab), region = 128  ;;  %2738 = vmatpush3.bf16.msra.mxu1 (%p1557_p10), %v2954_v19  ;;  %v2547_v18 = vmul.f32 (%p1557_p10), -1.442695, %v4628_v0  ;;  %v2960_v14 = vld [vmem:[#allocation15 + $0x8] sm:$0xff] (%p1557_p10)  }
 0x1dd   : >> { %1979 = vst [vmem:[#allocation2 + $0x20] sm:$0xff] %v1941_v42  ;;  %1980 = vst [vmem:[#allocation2 + $0x10] sm:$0xff] %v1943_v23  ;;  %v1951_v5 = vsel %vm670_vm0, %v1948_v22, %v1950_v47  ;;  %v1952_v28 = vsel %vm670_vm0, %v1950_v47, %v1906_v60  ;;  %2739 = vmatprep.subr.bf16.mxu1 (%p1557_p10), %v2955_v8  ;;  %2962 = vpow2.f32 (%p1557_p10), %v2546_v58  ;;  %v2548_v30 = vmul.f32 (%p1557_p10), -1.442695, %v4629_v39  ;;  %v2114_v50 = vld [vmem:[#allocation4 + $0x10] sm:$0xff] (%p1557_p10)  ;;  %v2115_v21 = vld [vmem:[#allocation4 + $0x38] sm:$0xff] (%p1557_p10) }
 0x1de   : >> { %1981 = vst [vmem:[#allocation2 + $0x38] sm:$0xff] %v1945_v37  ;;  %1982 = vst [vmem:[#allocation2 + $0x60] sm:$0xff] %v1947_v27  ;;  %2964 = vpow2.f32 (%p1557_p10), %v2547_v18  ;;  %v2549_v34 = vmul.f32 (%p1557_p10), -1.442695, %v4630_v16  ;;  %v2550_v52 = vmul.f32 (%p1557_p10), -1.442695, %v4631_v57 }
 0x1df   : >> { %1983 = vst [vmem:[#allocation2 + $0x70] sm:$0xff] %v1949_v51  ;;  %1984 = vst [vmem:[#allocation2 + $0x78] sm:$0xff] %v1951_v5  ;;  %2966 = vrcp.f32 (%p1557_p10), %v2108_v31  ;;  %v2551_v13 = vmul.f32 (%p1557_p10), -1.442695, %v4632_v32  ;;  %v2552_v60 = vmul.f32 (%p1557_p10), -1.442695, %v4633_v1 }
 0x1e0   : >> { %1985 = vst [vmem:[#allocation2 + $0x28] sm:$0xff] %v1952_v28  ;;  %2740 = vmatpush3.bf16.msra.mxu1 (%p1557_p10), %v2955_v8  ;;  %2968 = vrcp.f32 (%p1557_p10), %v2109_v2  ;;  %v2553_v35 = vmul.f32 (%p1557_p10), -1.442695, %v4634_v40  ;;  %v2961_v61 = vld [vmem:[#allocation15] sm:$0xff] (%p1557_p10)   ;;  %v4635_v46 = vld [vmem:[#allocation49_spill] sm:$0xff] (%p1557_p10)  ;;  %v2117_v62 = vld [vmem:[#allocation4 + $0x28] sm:$0xff] (%p1557_p10) }
 0x1e1   : > { %2741 = vmatprep.subr.bf16.mxu1 %v2956_v9  ;;  %2970 = vpow2.f32 %v2548_v30  ;;  %v2554_v25 = vmul.f32 -1.442695, %v4635_v46  ;;  %v4636_v63 = vld [vmem:[#allocation51_spill] sm:$0xff]  ;;  %v2116_v53 = vld [vmem:[#allocation4 + $0x40] sm:$0xff]  ;;  %v4637_v20 = vld [vmem:[#allocation48_spill] sm:$0xff] }
 0x1e2   : > { %2972 = vpow2.f32 %v2549_v34  ;;  %v2555_v7 = vmul.f32 -1.442695, %v4636_v63  ;;  %v2556_v42 = vmul.f32 -1.442695, %v4637_v20  ;;  %v2092_v37 = vld [vmem:[#allocation5 + $0x18] sm:$0xff]  ;;  %v4638_v22 = vld [vmem:[#allocation50_spill] sm:$0xff] }
 0x1e3   : > { %2974 = vrcp.f32 %v2110_v49  ;;  %v2557_v47 = vmul.f32 -1.442695, %v4638_v22  ;;  %v2093_v51 = vld [vmem:[#allocation5 + $0x38] sm:$0xff]  ;;  %v2094_v10 = vld [vmem:[#allocation5 + $0x48] sm:$0xff]  ;;  %v2095_v18 = vld [vmem:[#allocation5 + $0x40] sm:$0xff] }
 0x1e4   : > { %2742 = vmatpush3.bf16.msra.mxu1 %v2956_v9  ;;  %2976 = vrcp.f32 %v2111_v44  ;;  %v4639_v31 = vld [vmem:[#allocation53_spill] sm:$0xff]  ;;  %v4640_v30 = vld [vmem:[#allocation55_spill] sm:$0xff]  ;;  %v2096_v32 = vld [vmem:[#allocation5 + $0x28] sm:$0xff] }
 0x1e5   : > { %2743 = vmatprep.subr.bf16.mxu1 %v2957_v33  ;;  %2978 = vpow2.f32 %v2550_v52  ;;  %v2558_v2 = vmul.f32 -1.442695, %v4639_v31  ;;  %v2559_v16 = vmul.f32 -1.442695, %v4640_v30  ;;  %v2118_v40 = vld [vmem:[#allocation4 + $0x70] sm:$0xff]  ;;  %v2102_v30 = vld [vmem:[#allocation5 + $0x78] sm:$0xff] }
 0x1e6   : > { %2980 = vpow2.f32 %v2551_v13 }
 0x1e7   : > { %2982 = vrcp.f32 %v2112_v59 }
 0x1e8   : > { %2744 = vmatpush3.bf16.msra.mxu1 %v2957_v33  ;;  %2984 = vrcp.f32 %v2113_v15 }
 0x1e9   : > { %2745 = vmatprep.subr.bf16.mxu1 %v2958_v43  ;;  %2986 = vpow2.f32 %v2552_v60 }
 0x1ea   : > { %v2963_v41 = vpop.eup %2962  ;;  %2988 = vpow2.f32 %v2553_v35 }
 0x1eb   : > { %v2965_v3 = vpop.eup %2964  ;;  %v2044_v6 = vadd.f32 1.0, %v2963_v41  ;;  %2990 = vrcp.f32 %v2114_v50  ;;  %v4641_v41 = vld [vmem:[#allocation52_spill] sm:$0xff] }
 0x1ec   : > { %2746 = vmatpush3.bf16.msra.mxu1 %v2958_v43  ;;  %v2967_v29 = vpop.eup %2966  ;;  %v2045_v4 = vadd.f32 1.0, %v2965_v3  ;;  %2992 = vrcp.f32 %v2115_v21  ;;  %v2119_v21 = vld [vmem:[#allocation4 + $0x20] sm:$0xff]  ;;  %v2560_v3 = vmul.f32 -1.442695, %v4641_v41 }
 0x1ed   : > { %2747 = vmatprep.subr.bf16.mxu1 %v2959_v45  ;;  %v2969_v54 = vpop.eup %2968  ;;  %2994 = vrcp.f32 %v2044_v6  ;;  %v2140_v19 = vmul.f32 %v2967_v29, %v2092_v37  ;;  %v4642_v29 = vld [vmem:[#allocation54_spill] sm:$0xff] }
 0x1ee   : > { %v2971_v36 = vpop.eup %2970  ;;  %2996 = vrcp.f32 %v2045_v4  ;;  %v2141_v33 = vmul.f32 %v2969_v54, %v2093_v51  ;;  %v2561_v4 = vmul.f32 -1.442695, %v4642_v29  ;;  %v2122_v51 = vld [vmem:[#allocation4 + $0x50] sm:$0xff] }
 0x1ef   : > { %v2973_v11 = vpop.eup %2972  ;;  %v2046_v17 = vadd.f32 1.0, %v2971_v36  ;;  %2998 = vpow2.f32 %v2554_v25  ;;  %v2098_v25 = vld [vmem:[#allocation5 + $0x8] sm:$0xff] }
 0x1f0   : > { %2748 = vmatpush3.bf16.msra.mxu1 %v2959_v45  ;;  %v2975_v12 = vpop.eup %2974  ;;  %v2047_v55 = vadd.f32 1.0, %v2973_v11  ;;  %3000 = vpow2.f32 %v2555_v7  ;;  %v2097_v45 = vld [vmem:[#allocation5] sm:$0xff]  ;;  %v2099_v7 = vld [vmem:[#allocation5 + $0x70] sm:$0xff]  ;;  %v2120_v11 = vld [vmem:[#allocation4 + $0x58] sm:$0xff] }
 0x1f1   : > { %2749 = vmatprep.subr.bf16.mxu1 %v2960_v14  ;;  %v2977_v38 = vpop.eup %2976  ;;  %3002 = vrcp.f32 %v2046_v17  ;;  %v2142_v49 = vmul.f32 %v2975_v12, %v2094_v10 }
 0x1f2   : > { %v2979_v56 = vpop.eup %2978  ;;  %3004 = vrcp.f32 %v2047_v55  ;;  %v2143_v52 = vmul.f32 %v2977_v38, %v2095_v18 }
 0x1f3   : > { %v2981_v26 = vpop.eup %2980  ;;  %v2048_v48 = vadd.f32 1.0, %v2979_v56  ;;  %3006 = vrcp.f32 %v2116_v53  ;;  %v2121_v53 = vld [vmem:[#allocation4 + $0x30] sm:$0xff] }
 0x1f4   : > { %2750 = vmatpush3.bf16.msra.mxu1 %v2960_v14  ;;  %v2983_v23 = vpop.eup %2982  ;;  %v2049_v24 = vadd.f32 1.0, %v2981_v26  ;;  %3008 = vrcp.f32 %v2117_v62 }
 0x1f5   : > { %2751 = vmatprep.subr.bf16.mxu1 %v2961_v61  ;;  %v2985_v27 = vpop.eup %2984  ;;  %3010 = vrcp.f32 %v2048_v48  ;;  %v2144_v50 = vmul.f32 %v2983_v23, %v2096_v32  ;;  %v2100_v23 = vld [vmem:[#allocation5 + $0x68] sm:$0xff] }
 0x1f6   : > { %v2987_v5 = vpop.eup %2986  ;;  %3012 = vrcp.f32 %v2049_v24  ;;  %v2145_v46 = vmul.f32 %v2985_v27, %v2097_v45 }
 0x1f7   : > { %v2989_v28 = vpop.eup %2988  ;;  %v2050_v8 = vadd.f32 1.0, %v2987_v5  ;;  %3014 = vpow2.f32 %v2556_v42 }
 0x1f8   : > { %2752 = vmatpush3.bf16.msra.mxu1 %v2961_v61  ;;  %v2991_v9 = vpop.eup %2990  ;;  %v2051_v58 = vadd.f32 1.0, %v2989_v28  ;;  %3016 = vpow2.f32 %v2557_v47  ;;  %v2101_v47 = vld [vmem:[#allocation5 + $0x60] sm:$0xff]  ;;  %v2123_v28 = vld [vmem:[#allocation4 + $0x78] sm:$0xff] }
 0x1f9   : > { %v2993_v0 = vpop.eup %2992  ;;  %3018 = vrcp.f32 %v2050_v8  ;;  %v2146_v55 = vmul.f32 %v2991_v9, %v2098_v25 }
 0x1fa   : > { %v2995_v39 = vpop.eup %2994  ;;  %3020 = vrcp.f32 %v2051_v58  ;;  %v2147_v56 = vmul.f32 %v2993_v0, %v2099_v7 }
 0x1fb   : > { %v2997_v34 = vpop.eup %2996  ;;  %v2156_v43 = vmul.f32 %v2995_v39, %v2140_v19  ;;  %3022 = vpow2.f32 %v2558_v2 }
 0x1fc   : > { %v2999_v44 = vpop.eup %2998  ;;  %v2157_v57 = vmul.f32 %v2997_v34, %v2141_v33  ;;  %3024 = vpow2.f32 %v2559_v16  ;;  %v2103_v34 = vld [vmem:[#allocation5 + $0x30] sm:$0xff] }
 0x1fd   : > { %v3001_v13 = vpop.eup %3000  ;;  %v2052_v59 = vadd.f32 1.0, %v2999_v44 }
 0x1fe   : > { %v3003_v15 = vpop.eup %3002  ;;  %v2172_v1 = vpack.c.bf16 %v2157_v57, %v2156_v43  ;;  %v2053_v60 = vadd.f32 1.0, %v3001_v13 }
 0x1ff   : > { %v3005_v35 = vpop.eup %3004  ;;  %v2158_v14 = vmul.f32 %v3003_v15, %v2142_v49  ;;  %3026 = vrcp.f32 %v2052_v59 }
 0x200   : > { %v3007_v61 = vpop.eup %3006  ;;  %2753 = vmatprep.mubr.bf16.mxu1 %v2172_v1  ;;  %v2159_v6 = vmul.f32 %v3005_v35, %v2143_v52  ;;  %3028 = vrcp.f32 %v2053_v60  ;;  %v2104_v1 = vld [vmem:[#allocation5 + $0x50] sm:$0xff]  ;;  %v2105_v35 = vld [vmem:[#allocation5 + $0x20] sm:$0xff] }
 0x201   : > { %v3009_v63 = vpop.eup %3008  ;;  %3030 = vrcp.f32 %v2118_v40  ;;  %v2148_v5 = vmul.f32 %v3007_v61, %v2100_v23 }
 0x202   : > { %v3011_v54 = vpop.eup %3010  ;;  %v2173_v36 = vpack.c.bf16 %v2159_v6, %v2158_v14  ;;  %3032 = vrcp.f32 %v2119_v21  ;;  %v2149_v9 = vmul.f32 %v3009_v63, %v2101_v47 }
 0x203   : > { %v3013_v17 = vpop.eup %3012  ;;  %v2160_v12 = vmul.f32 %v3011_v54, %v2144_v50  ;;  %3034 = vpow2.f32 %v2560_v3 }
 0x204   : > { %v3015_v38 = vpop.eup %3014  ;;  %2754 = vmatmul.mubr.bf16.vlgmr.msra.gmra.mxu1 %v2173_v36  ;;  %v2161_v62 = vmul.f32 %v3013_v17, %v2145_v46  ;;  %3036 = vpow2.f32 %v2561_v4  ;;  %v2106_v46 = vld [vmem:[#allocation5 + $0x58] sm:$0xff]  ;;  %v2107_v4 = vld [vmem:[#allocation5 + $0x10] sm:$0xff] }
 0x205   : > { %v3017_v26 = vpop.eup %3016  ;;  %v2054_v48 = vadd.f32 1.0, %v3015_v38  ;;  %3038 = vrcp.f32 %v2120_v11 }
 0x206   : > { %v3019_v20 = vpop.eup %3018  ;;  %v2174_v42 = vpack.c.bf16 %v2161_v62, %v2160_v12  ;;  %v2055_v37 = vadd.f32 1.0, %v3017_v26  ;;  %3040 = vrcp.f32 %v2121_v53 }
 0x207   : > { %v3021_v24 = vpop.eup %3020  ;;  %v2162_v22 = vmul.f32 %v3019_v20, %v2146_v55  ;;  %3042 = vrcp.f32 %v2054_v48 }
 0x208   : > { %2757 = vmatprep.mubr.bf16.mxu1 %v2174_v42  ;;  %v2163_v27 = vmul.f32 %v3021_v24, %v2147_v56  ;;  %3044 = vrcp.f32 %v2055_v37  ;;  %v3023_v19 = vpop.eup %3022 }
 0x209   : > { %v3025_v33 = vpop.eup %3024  ;;  %v2056_v10 = vadd.f32 1.0, %v3023_v19  ;;  %3046 = vrcp.f32 %v2122_v51 }
 0x20a   : > { %v2175_v8 = vpack.c.bf16 %v2163_v27, %v2162_v22  ;;  %v2057_v0 = vadd.f32 1.0, %v3025_v33  ;;  %3048 = vrcp.f32 %v2123_v28 }
 0x20b   : > { %3050 = vrcp.f32 %v2056_v10 }
 0x20c   : > { %v3027_v58 = vpop.eup %3026  ;;  %2758 = vmatmul.mubr.bf16.gmra.mxu1 %v2175_v8  ;;  %3052 = vrcp.f32 %v2057_v0 }
 0x20d   : > { %v3029_v18 = vpop.eup %3028  ;;  %v2164_v31 = vmul.f32 %v3027_v58, %v2148_v5 }
 0x20e   : > { %v3031_v2 = vpop.eup %3030  ;;  %v2165_v39 = vmul.f32 %v3029_v18, %v2149_v9 }
 0x20f   : > { %v3033_v16 = vpop.eup %3032  ;;  %v2150_v57 = vmul.f32 %v3031_v2, %v2102_v30 }
 0x210   : > { %v3035_v43 = vpop.eup %3034  ;;  %v2176_v49 = vpack.c.bf16 %v2165_v39, %v2164_v31  ;;  %v2151_v13 = vmul.f32 %v3033_v16, %v2103_v34 }
 0x211   : > { %v3037_v44 = vpop.eup %3036  ;;  %v2058_v52 = vadd.f32 1.0, %v3035_v43 }
 0x212   : > { %v3039_v32 = vpop.eup %3038  ;;  %2761 = vmatprep.mubr.bf16.mxu1 %v2176_v49  ;;  %v2059_v45 = vadd.f32 1.0, %v3037_v44 }
 0x213   : > { %v3041_v59 = vpop.eup %3040  ;;  %3054 = vrcp.f32 %v2058_v52  ;;  %v2152_v50 = vmul.f32 %v3039_v32, %v2104_v1 }
 0x214   : > { %v3043_v15 = vpop.eup %3042  ;;  %3056 = vrcp.f32 %v2059_v45  ;;  %v2153_v3 = vmul.f32 %v3041_v59, %v2105_v35 }
 0x215   : > { %v3045_v60 = vpop.eup %3044  ;;  %v2166_v40 = vmul.f32 %v3043_v15, %v2150_v57 }
 0x216   : > { %v2167_v14 = vmul.f32 %v3045_v60, %v2151_v13  ;;  %v3047_v21 = vpop.eup %3046 }
 0x217   : > { %v3049_v61 = vpop.eup %3048  ;;  %v2154_v7 = vmul.f32 %v3047_v21, %v2106_v46 }
 0x218   : > { %v2177_v41 = vpack.c.bf16 %v2167_v14, %v2166_v40  ;;  %v3051_v6 = vpop.eup %3050  ;;  %v2155_v36 = vmul.f32 %v3049_v61, %v2107_v4 }
 0x219   : > { %v3053_v25 = vpop.eup %3052  ;;  %v2168_v29 = vmul.f32 %v3051_v6, %v2152_v50 }
 0x21a   : > { %2762 = vmatmul.mubr.bf16.gmra.mxu1 %v2177_v41  ;;  %v2169_v63 = vmul.f32 %v3053_v25, %v2153_v3 }
 0x21c   : > { %v2178_v54 = vpack.c.bf16 %v2169_v63, %v2168_v29 }
 0x21e   : > { %2765 = vmatprep.mubr.bf16.mxu1 %v2178_v54 }
 0x220   : > { %v3055_v11 = vpop.eup %3054 }
 0x221   : > { %v3057_v17 = vpop.eup %3056  ;;  %v2170_v12 = vmul.f32 %v3055_v11, %v2154_v7 }
 0x222   : > { %v2171_v55 = vmul.f32 %v3057_v17, %v2155_v36 }
 0x224   : > { %v2179_v53 = vpack.c.bf16 %v2171_v55, %v2170_v12 }
 0x226   : > { %2766 = vmatmul.mubr.bf16.gmra.mxu1 %v2179_v53 }
 0x2c4   : > { %v2755_v38 = vpop.f32.mrf.mxu1 }
 0x2c5   : > { %2343 = vst [vmem:[%s4042_s28 + $0x10] sm:$0xff] %v2755_v38 }
 0x2c6   : > { %v2278_v62 = vpop.f32.mrf.mxu1 }
 0x2c7   : > { %2341 = vst [vmem:[%s4042_s28] sm:$0xff] %v2278_v62 }
 0x2c8   : > { %v2756_v56 = vpop.f32.mrf.mxu1 }
 0x2c9   : > { %2344 = vst [vmem:[%s4042_s28 + $0x18] sm:$0xff] %v2756_v56 }
 0x2ca   : > { %v2281_v26 = vpop.f32.mrf.mxu1 }
 0x2cb   : > { %2342 = vst [vmem:[%s4042_s28 + $0x8] sm:$0xff] %v2281_v26 }
 0x2cc   : > { %v2759_v48 = vpop.f32.mrf.mxu1 }
 0x2cd   : > { %2347 = vst [vmem:[%s4042_s28 + $0x30] sm:$0xff] %v2759_v48 }
 0x2ce   : > { %v2294_v20 = vpop.f32.mrf.mxu1 }
 0x2cf   : > { %2345 = vst [vmem:[%s4042_s28 + $0x20] sm:$0xff] %v2294_v20 }
 0x2d0   : > { %v2760_v42 = vpop.f32.mrf.mxu1 }
 0x2d1   : > { %2348 = vst [vmem:[%s4042_s28 + $0x38] sm:$0xff] %v2760_v42 }
 0x2d2   : > { %v2297_v23 = vpop.f32.mrf.mxu1 }
 0x2d3   : > { %2346 = vst [vmem:[%s4042_s28 + $0x28] sm:$0xff] %v2297_v23 }
 0x2da   : > { %v2763_v37 = vpop.f32.mrf.mxu1 }
 0x2db   : > { %2351 = vst [vmem:[%s4042_s28 + $0x50] sm:$0xff] %v2763_v37 }
 0x2dc   : > { %v2310_v24 = vpop.f32.mrf.mxu1 }
 0x2dd   : > { %2349 = vst [vmem:[%s4042_s28 + $0x40] sm:$0xff] %v2310_v24 }
 0x2de   : > { %v2764_v22 = vpop.f32.mrf.mxu1 }
 0x2df   : > { %2352 = vst [vmem:[%s4042_s28 + $0x58] sm:$0xff] %v2764_v22 }
 0x2e0   : > { %v2313_v47 = vpop.f32.mrf.mxu1 }
 0x2e1   : > { %2350 = vst [vmem:[%s4042_s28 + $0x48] sm:$0xff] %v2313_v47 }
 0x2e6   : > { %v2767_v27 = vpop.f32.mrf.mxu1 }
 0x2e7   : > { %2355 = vst [vmem:[%s4042_s28 + $0x70] sm:$0xff] %v2767_v27 }
 0x2e8   : > { %v2326_v51 = vpop.f32.mrf.mxu1 }
 0x2e9   : > { %2353 = vst [vmem:[%s4042_s28 + $0x60] sm:$0xff] %v2326_v51 }
 0x2ea   : > { %v2768_v5 = vpop.f32.mrf.mxu1 }
 0x2eb   : > { %2356 = vst [vmem:[%s4042_s28 + $0x78] sm:$0xff] %v2768_v5 }
 0x2ec   : > { %v2329_v28 = vpop.f32.mrf.mxu1 }
 0x2ed   : > { %2354 = vst [vmem:[%s4042_s28 + $0x68] sm:$0xff] %v2329_v28 }
 0x2ee   : > { %3229 = shalt.err (!%p3226_p4)
}
 0x2ef   : > { %s3230_s21 = scalar_lea.hbm %s4417_s20, 2048  ;;  %s3234_s28 = scalar_lea.hbm %s4473_s9, 4096 }
 0x2f0   : > { %p3231_p12 = scmp.ne.s32.totalorder %s4417_s20, %s3230_s21  ;;  %p3235_p7 = scmp.lt.s32.totalorder %s4417_s20, %s4473_s9 }
 0x2f1   : > { %p3236_p8 = scmp.lt.s32.totalorder %s3234_s28, %s3230_s21 }
 0x2f2   : > { %p3232_p6 = pnand %p3231_p12, %p4643_p0 }
 0x2f3   : > { %p3237_p10 = por %p3236_p8, %p3235_p7 }
 0x2f4   : > { %p3233_p2 = pneg %p3232_p6 }
 0x2f6   : > { %p3238_p11 = pnand %p3237_p10, %p3233_p2 }
 0x2f8   : > { %3241 = shalt.err (!%p3238_p11)
}
 0x2f9   : > { %s3331_s26 = smov 128   ;;  %s3332_s6 = smov 8  }
 0x2fa   : > { %2791 = dma.vmem_to_hbm [thread:$0]  (%p4643_p0), %s4419_s1, 2048, %s4417_s20, %s2358_s17, %s3331_s26, %s3331_s26, %s3332_s6  }
 0x2fb PF: > { %s2386_s16 = sand.u32 1, %s3292_s30   ;;  %p4644_p13 = scmp.ne.s32.totalorder %s4520_s14, 0 }
 0x2fc   : > { %p4645_p5 = scmp.ge.s32.totalorder %s3304_s12, 2  ;;  %s2387_s15 = scalar_lea.sflag [#allocation8], %s2386_s16 }
 0x2fe   : > { %p2814_p9 = pnand %p4645_p5, %p4644_p13 }
 0x300   : > { %p2815_p1 = pneg %p2814_p9 }
 0x302   : > { %3287 = dma.done.wait (%p2815_p1), %s2387_s15, 2048  }
 0x303   : > { %3289 = vsyncadd (%p2815_p1), %s2387_s15, 4294965248  ;;  %p25_p3 = scmp.ge.s32.totalorder %s3490_s22, 4   ;;  %s4646_s30 = smov %s3296_s10 }
 0x304   : > { %s4647_s10 = smov %s3300_s11  ;;  %s4648_s11 = smov %s3502_s18 }
 0x305   : > { %s4649_s12 = smov %s3490_s22  ;;  %27 = sbr.rel (!%p25_p3) target bundleno = 12 (0xc), region = 139 }
 0x30a   :  { %2392 = vsyncpa [#allocation7], 1 }
 0x30b   :  { %2394 = vsyncpa [#allocation7 + $0x1], 1 }
 0x30c   :  { %2395 = vsyncpa [#allocation10], 1 }
 0x30d   :  { %2396 = vsyncpa [#allocation13], 1 }
 0x30e   :  { %2397 = vsyncpa [#allocation16], 1 }
 0x30f   :  { %2398 = vsyncpa [#allocation8], 1 }
 0x310   :  { %2400 = vsyncpa [#allocation8 + $0x1], 1 }

</bundles_post_ra>
